<compile_context>
chip_gen: v7x
topology: tpu7x:2x2x1
jax: 0.10.0
libtpu: 0.0.40
codegen_flags: <defaults>
</compile_context>

<pallas_src>
import functools
import math

import jax
import jax.numpy as jnp
import numpy as np
from jax.experimental import pallas as pl
from jax.experimental.pallas import tpu as pltpu


# ---------------------------------------------------------------------------
# Host-side helpers (static layout / weight transforms, done once per call)
# ---------------------------------------------------------------------------
def _banded_weights(w_hwio, W):
    """(KH, KW, Cin, Cout) -> (KH, W*Cin, W*Cout) banded matrices.

    Wb[ky, wi*Cin+ci, wo*Cout+co] = w[ky, wi-wo+1, ci, co] when |wi-wo| <= 1,
    else 0.  One matmul with K = W*Cin per ky tap then implements the full
    width-3 convolution over W, including the zero padding at the W borders.
    """
    KH, KW, Ci, Co = w_hwio.shape
    band = np.zeros((KW, W, W), np.float32)
    for kx in range(KW):
        for wo in range(W):
            wi = wo + kx - (KW // 2)
            if 0 <= wi < W:
                band[kx, wi, wo] = 1.0
    wb = jnp.einsum("ykio,kab->yaibo",
                    w_hwio.astype(jnp.float32), jnp.asarray(band))
    return wb.reshape(KH, W * Ci, W * Co)


def _group_factor(C, G, W):
    """(W*C, G) 0/1 membership matrix: m[l, g] = 1 iff lane l is in group g."""
    grp = (np.arange(W * C) % C) // (C // G)
    return (grp[:, None] == np.arange(G)[None, :]).astype(np.float32)


# ---------------------------------------------------------------------------
# Fused kernel: one batch sample per grid step
# ---------------------------------------------------------------------------
def _res_block_kernel(x_ref, wb1_ref, w2r_ref, mask_ref,
                      m1_ref, m1t_ref, m2_ref, m2t_ref,
                      g1_ref, b1_ref, g2_ref, b2_ref,
                      o_ref, slab_ref,
                      *, inv_cnt1, inv_cnt2, eps):
    f32 = jnp.float32
    _, D, H, WCi = x_ref.shape
    Hp = H + 2
    Mout = D * Hp - 2                      # matmul M; acc row r <-> slab row r+1
    WCo = o_ref.shape[-1]
    K1 = wb1_ref.shape[1]                  # WCi (lane-aligned) or 2*WCi (padded K)

    # ---- build the zero-bordered slab once; lanes = [x | gn1_out] -----------
    slab_ref[...] = jnp.zeros(slab_ref.shape, slab_ref.dtype)
    for d in range(D):                     # D small stores; no matmuls unrolled
        slab_ref[pl.ds(d * Hp + 1, H), pl.ds(0, WCi)] = x_ref[0, d]

    mask = mask_ref[...]                   # (Mout, 1): 1 on data rows, 0 on halos

    def gn_scale_shift(r, m_ref_, mt_ref_, gamma, beta, inv_cnt):
        # r: (Mout, WC) f32 masked activations.  Two XLU reduces total.
        s = jnp.concatenate([jnp.sum(r, axis=0, keepdims=True),
                             jnp.sum(r * r, axis=0, keepdims=True)], axis=0)
        sg = jnp.dot(s, m_ref_[...], preferred_element_type=f32) * inv_cnt
        sl = jnp.dot(sg, mt_ref_[...], preferred_element_type=f32)   # (2, WC)
        mean = sl[0:1]
        var = jnp.maximum(sl[1:2] - mean * mean, 0.0)   # clamp E[x^2]-E[x]^2
        inv = jax.lax.rsqrt(var + eps)
        scale = inv * gamma
        shift = beta - mean * scale
        return scale, shift

    # ---- stage 1: conv1 + ReLU (whole sample, 3 banded matmuls) -------------
    acc1 = jnp.zeros((Mout, WCi), f32)
    for ky in range(3):
        acc1 += jnp.dot(slab_ref[pl.ds(ky, Mout), pl.ds(0, K1)], wb1_ref[ky],
                        preferred_element_type=f32)
    r1 = jnp.maximum(acc1, 0.0) * mask
    scale1, shift1 = gn_scale_shift(r1, m1_ref, m1t_ref,
                                    g1_ref[...], b1_ref[...], inv_cnt1)
    # GN1 affine; halo rows forced back to zero; ONE bf16 store into the y half.
    y1 = (r1 * scale1 + shift1) * mask
    slab_ref[pl.ds(1, Mout), pl.ds(WCi, WCi)] = y1.astype(slab_ref.dtype)

    # ---- stage 2: conv2 + conv_res/identity fused (K = 2*W*Cin) + ReLU ------
    acc2 = jnp.zeros((Mout, WCo), f32)
    for ky in range(3):
        acc2 += jnp.dot(slab_ref[pl.ds(ky, Mout), :], w2r_ref[ky],
                        preferred_element_type=f32)
    r2 = jnp.maximum(acc2, 0.0) * mask
    scale2, shift2 = gn_scale_shift(r2, m2_ref, m2t_ref,
                                    g2_ref[...], b2_ref[...], inv_cnt2)
    out = r2 * scale2 + shift2

    # ---- single bf16 writeback of the valid rows (halo rows skipped) --------
    for d in range(D):
        o_ref[0, d] = out[d * Hp:d * Hp + H].astype(o_ref.dtype)


# ---------------------------------------------------------------------------
# Wrapper
# ---------------------------------------------------------------------------
def res_block_forward(x_ndhwc, params, *, num_groups1, num_groups2,
                      is_projection, eps=1e-5):
    N, D, H, W, Cin = x_ndhwc.shape
    Cout = params["w2"].shape[-1]
    G1, G2 = num_groups1, num_groups2
    assert Cin % G1 == 0 and Cout % G2 == 0, "GroupNorm needs C % G == 0"
    if not is_projection and Cin != Cout:
        raise ValueError("identity residual requires in_channels == out_channels")
    WCi, WCo = W * Cin, W * Cout
    Hp = H + 2
    Mslab, Mout = D * Hp, D * Hp - 2
    bf16 = jnp.bfloat16

    # conv1 banded weights.  If W*Cin is lane-tile aligned the kernel reads just
    # the x half of the slab (K = W*Cin); otherwise pad K to 2*W*Cin with zeros
    # on the (zeroed) y half so the LHS read stays a plain full-width slice.
    wb1 = _banded_weights(params["w1"], W)
    if WCi % 128 != 0:
        wb1 = jnp.concatenate([wb1, jnp.zeros_like(wb1)], axis=1)
    wb1 = wb1.astype(bf16)

    # conv2 + residual fused along K: weight rows = [x half ; y half].
    wb2 = _banded_weights(params["w2"], W)
    if is_projection:
        wbr = _banded_weights(params["wres"], W)
    else:                                   # identity residual as identity band
        wbr = jnp.zeros((3, WCi, WCo), jnp.float32).at[1].set(jnp.eye(WCi))
    w2r = jnp.concatenate([wbr, wb2], axis=1).astype(bf16)    # (3, 2*WCi, WCo)

    # Factored GroupNorm group-membership matrices + lane-broadcast gamma/beta.
    m1_np = _group_factor(Cin, G1, W)
    m2_np = _group_factor(Cout, G2, W)
    m1, m1t = jnp.asarray(m1_np), jnp.asarray(m1_np.T)
    m2, m2t = jnp.asarray(m2_np), jnp.asarray(m2_np.T)
    g1l = jnp.tile(params["g1"].reshape(1, Cin).astype(jnp.float32), (1, W))
    b1l = jnp.tile(params["b1"].reshape(1, Cin).astype(jnp.float32), (1, W))
    g2l = jnp.tile(params["g2"].reshape(1, Cout).astype(jnp.float32), (1, W))
    b2l = jnp.tile(params["b2"].reshape(1, Cout).astype(jnp.float32), (1, W))

    # Validity mask for accumulator rows (acc row r is centered on slab row r+1).
    rows = np.arange(Mout)
    valid = ((rows % Hp) < H).astype(np.float32).reshape(Mout, 1)
    valid = jnp.asarray(valid)

    # Fold W into the lane dimension; bf16 halves the HBM read of x.
    x_l = x_ndhwc.reshape(N, D, H, WCi).astype(bf16)

    kernel = functools.partial(
        _res_block_kernel,
        inv_cnt1=1.0 / float(D * H * W * (Cin // G1)),
        inv_cnt2=1.0 / float(D * H * W * (Cout // G2)),
        eps=float(eps))

    const3 = lambda n: (0, 0, 0)
    const2 = lambda n: (0, 0)
    per_sample = lambda n: (n, 0, 0, 0)

    out = pl.pallas_call(
        kernel,
        out_shape=jax.ShapeDtypeStruct((N, D, H, WCo), bf16),
        grid_spec=pltpu.PrefetchScalarGridSpec(
            num_scalar_prefetch=0,
            grid=(N,),
            in_specs=[
                pl.BlockSpec((1, D, H, WCi), per_sample),        # x (bf16)
                pl.BlockSpec(wb1.shape, const3),                 # banded conv1
                pl.BlockSpec((3, 2 * WCi, WCo), const3),         # conv2 + residual
                pl.BlockSpec((Mout, 1), const2),                 # row validity mask
                pl.BlockSpec((WCi, G1), const2),                 # GN1 group factor
                pl.BlockSpec((G1, WCi), const2),                 # GN1 group factor^T
                pl.BlockSpec((WCo, G2), const2),                 # GN2 group factor
                pl.BlockSpec((G2, WCo), const2),                 # GN2 group factor^T
                pl.BlockSpec((1, WCi), const2),                  # gamma1 (lane bcast)
                pl.BlockSpec((1, WCi), const2),                  # beta1
                pl.BlockSpec((1, WCo), const2),                  # gamma2
                pl.BlockSpec((1, WCo), const2),                  # beta2
            ],
            out_specs=pl.BlockSpec((1, D, H, WCo), per_sample),
            scratch_shapes=[
                pltpu.VMEM((Mslab, 2 * WCi), bf16),   # zero-bordered [x | y] slab
            ],
        ),
        compiler_params=pltpu.CompilerParams(
            dimension_semantics=("parallel",),
            vmem_limit_bytes=32 * 1024 * 1024),
    )(x_l, wb1, w2r, valid, m1, m1t, m2, m2t, g1l, b1l, g2l, b2l)

    return out.reshape(N, D, H, W, Cout)


# ---------------------------------------------------------------------------
# Pure-JAX reference (for correctness check)
# ---------------------------------------------------------------------------
def _ref_conv(inp, w):
    N, D, H, W, C = inp.shape
    y = jax.lax.conv_general_dilated(
        inp.reshape(N * D, H, W, C), w, window_strides=(1, 1),
        padding=((1, 1), (1, 1)), dimension_numbers=("NHWC", "HWIO", "NHWC"),
        precision=jax.lax.Precision.HIGHEST)
    return y.reshape(N, D, H, W, -1)


def _ref_gn(y, gamma, beta, G, eps=1e-5):
    N, D, H, W, C = y.shape
    yr = y.reshape(N, D * H * W, G, C // G)
    mean = yr.mean(axis=(1, 3), keepdims=True)
    var = ((yr - mean) ** 2).mean(axis=(1, 3), keepdims=True)
    yn = (yr - mean) / jnp.sqrt(var + eps)
    return (yn.reshape(N, D, H, W, C) * gamma.reshape(1, 1, 1, 1, C)
            + beta.reshape(1, 1, 1, 1, C))


def ref_res_block(x, params, G1, G2, is_projection):
    out = _ref_conv(x, params["w1"])
    out = jnp.maximum(out, 0.0)
    out = _ref_gn(out, params["g1"], params["b1"], G1)
    out = _ref_conv(out, params["w2"])
    residual = _ref_conv(x, params["wres"]) if is_projection else x
    out = out + residual
    out = jnp.maximum(out, 0.0)
    out = _ref_gn(out, params["g2"], params["b2"], G2)
    return out


# ---------------------------------------------------------------------------
if __name__ == "__main__":
    key = jax.random.PRNGKey(0)
    ks = jax.random.split(key, 16)
    rnd = lambda a: a.astype(jnp.bfloat16).astype(jnp.float32)  # bf16-rounded f32
    to_np = lambda a: np.asarray(a).astype(np.float32)

    # ---------- test 1: projection residual (Cin != Cout) ----------
    N, Cin, Cout, D, H, W = 2, 4, 8, 3, 16, 16
    x_ncdhw = jax.random.normal(ks[0], (N, Cin, D, H, W), jnp.float32)
    x = rnd(jnp.transpose(x_ncdhw, (0, 2, 3, 4, 1)))           # layout: NDHWC

    params = dict(
        w1=rnd(jax.random.normal(ks[1], (3, 3, Cin, Cin)) * 0.1),
        w2=rnd(jax.random.normal(ks[2], (3, 3, Cin, Cout)) * 0.1),
        wres=rnd(jax.random.normal(ks[3], (3, 3, Cin, Cout)) * 0.1),
        g1=1.0 + 0.1 * jax.random.normal(ks[4], (Cin,)),
        b1=0.1 * jax.random.normal(ks[5], (Cin,)),
        g2=1.0 + 0.1 * jax.random.normal(ks[6], (Cout,)),
        b2=0.1 * jax.random.normal(ks[7], (Cout,)),
    )
    G1 = math.ceil(Cin / 2)
    G2 = math.ceil(Cout / 2)

    out = res_block_forward(x, params, num_groups1=G1, num_groups2=G2,
                            is_projection=True)
    out = jax.block_until_ready(out)
    ref = jax.block_until_ready(ref_res_block(x, params, G1, G2, True))
    assert out.shape == (N, D, H, W, Cout)
    np.testing.assert_allclose(to_np(out), to_np(ref), atol=5e-2, rtol=5e-2)

    # ---------- test 2: identity residual (Cin == Cout, stride == 1) ----------
    C2 = 8
    x2_ncdhw = jax.random.normal(ks[8], (N, C2, D, H, W), jnp.float32)
    x2 = rnd(jnp.transpose(x2_ncdhw, (0, 2, 3, 4, 1)))
    params2 = dict(
        w1=rnd(jax.random.normal(ks[9], (3, 3, C2, C2)) * 0.1),
        w2=rnd(jax.random.normal(ks[10], (3, 3, C2, C2)) * 0.1),
        g1=1.0 + 0.1 * jax.random.normal(ks[11], (C2,)),
        b1=0.1 * jax.random.normal(ks[12], (C2,)),
        g2=1.0 + 0.1 * jax.random.normal(ks[13], (C2,)),
        b2=0.1 * jax.random.normal(ks[14], (C2,)),
    )
    Gc = math.ceil(C2 / 2)
    out2 = res_block_forward(x2, params2, num_groups1=Gc, num_groups2=Gc,
                             is_projection=False)
    out2 = jax.block_until_ready(out2)
    ref2 = jax.block_until_ready(ref_res_block(x2, params2, Gc, Gc, False))
    np.testing.assert_allclose(to_np(out2), to_np(ref2), atol=5e-2, rtol=5e-2)

    print("KERNEL_OK")
</pallas_src>

<mosaic_0001>
module attributes {stable_mosaic.version = 11 : i64} {
  func.func @_res_block_kernel(%arg0: i32, %arg1: memref<1x3x16x64xbf16, #tpu.memory_space<vmem>>, %arg2: memref<3x128x64xbf16, #tpu.memory_space<vmem>>, %arg3: memref<3x128x128xbf16, #tpu.memory_space<vmem>>, %arg4: memref<52x1xf32, #tpu.memory_space<vmem>>, %arg5: memref<64x2xf32, #tpu.memory_space<vmem>>, %arg6: memref<2x64xf32, #tpu.memory_space<vmem>>, %arg7: memref<128x4xf32, #tpu.memory_space<vmem>>, %arg8: memref<4x128xf32, #tpu.memory_space<vmem>>, %arg9: memref<1x64xf32, #tpu.memory_space<vmem>>, %arg10: memref<1x64xf32, #tpu.memory_space<vmem>>, %arg11: memref<1x128xf32, #tpu.memory_space<vmem>>, %arg12: memref<1x128xf32, #tpu.memory_space<vmem>>, %arg13: memref<1x3x16x128xbf16, #tpu.memory_space<vmem>>, %arg14: memref<54x128xbf16, #tpu.memory_space<vmem>>) attributes {dimension_semantics = [#tpu.dimension_semantics<parallel>], iteration_bounds = array<i64: 2>, scalar_prefetch = 0 : i64, scratch_operands = 1 : i64, tpu.core_type = #tpu.core_type<tc>, window_params = [{transform_indices = @transform_0, window_bounds = array<i64: 1, 3, 16, 64>}, {pipeline_mode = #tpu.pipeline_mode<synchronous>, transform_indices = @transform_1, window_bounds = array<i64: 3, 128, 64>}, {pipeline_mode = #tpu.pipeline_mode<synchronous>, transform_indices = @transform_2, window_bounds = array<i64: 3, 128, 128>}, {pipeline_mode = #tpu.pipeline_mode<synchronous>, transform_indices = @transform_3, window_bounds = array<i64: 52, 1>}, {pipeline_mode = #tpu.pipeline_mode<synchronous>, transform_indices = @transform_4, window_bounds = array<i64: 64, 2>}, {pipeline_mode = #tpu.pipeline_mode<synchronous>, transform_indices = @transform_5, window_bounds = array<i64: 2, 64>}, {pipeline_mode = #tpu.pipeline_mode<synchronous>, transform_indices = @transform_6, window_bounds = array<i64: 128, 4>}, {pipeline_mode = #tpu.pipeline_mode<synchronous>, transform_indices = @transform_7, window_bounds = array<i64: 4, 128>}, {pipeline_mode = #tpu.pipeline_mode<synchronous>, transform_indices = @transform_8, window_bounds = array<i64: 1, 64>}, {pipeline_mode = #tpu.pipeline_mode<synchronous>, transform_indices = @transform_9, window_bounds = array<i64: 1, 64>}, {pipeline_mode = #tpu.pipeline_mode<synchronous>, transform_indices = @transform_10, window_bounds = array<i64: 1, 128>}, {pipeline_mode = #tpu.pipeline_mode<synchronous>, transform_indices = @transform_11, window_bounds = array<i64: 1, 128>}, {transform_indices = @transform_12, window_bounds = array<i64: 1, 3, 16, 128>}]} {
    %cst = arith.constant 0.000000e+00 : bf16
    %0 = vector.broadcast %cst : bf16 to vector<54x128xbf16>
    %c0 = arith.constant 0 : index
    %c0_0 = arith.constant 0 : index
    %1 = vector.load %arg14[%c0, %c0_0] : memref<54x128xbf16, #tpu.memory_space<vmem>>, vector<54x128xbf16>
    tpu.vector_store %arg14[%c0, %c0_0], %0 {strides = array<i32>} : memref<54x128xbf16, #tpu.memory_space<vmem>>, vector<54x128xbf16>,
    %c0_1 = arith.constant 0 : index
    %c0_2 = arith.constant 0 : index
    %c0_3 = arith.constant 0 : index
    %c0_4 = arith.constant 0 : index
    %2 = vector.load %arg1[%c0_1, %c0_2, %c0_3, %c0_4] : memref<1x3x16x64xbf16, #tpu.memory_space<vmem>>, vector<1x1x16x64xbf16>
    %3 = vector.shape_cast %2 : vector<1x1x16x64xbf16> to vector<16x64xbf16>
    %c1 = arith.constant 1 : index
    %c0_5 = arith.constant 0 : index
    %4 = vector.load %arg14[%c1, %c0_5] : memref<54x128xbf16, #tpu.memory_space<vmem>>, vector<16x64xbf16>
    tpu.vector_store %arg14[%c1, %c0_5], %3 {strides = array<i32>} : memref<54x128xbf16, #tpu.memory_space<vmem>>, vector<16x64xbf16>,
    %c0_6 = arith.constant 0 : index
    %c1_7 = arith.constant 1 : index
    %c0_8 = arith.constant 0 : index
    %c0_9 = arith.constant 0 : index
    %5 = vector.load %arg1[%c0_6, %c1_7, %c0_8, %c0_9] : memref<1x3x16x64xbf16, #tpu.memory_space<vmem>>, vector<1x1x16x64xbf16>
    %6 = vector.shape_cast %5 : vector<1x1x16x64xbf16> to vector<16x64xbf16>
    %c19 = arith.constant 19 : index
    %c0_10 = arith.constant 0 : index
    %7 = vector.load %arg14[%c19, %c0_10] : memref<54x128xbf16, #tpu.memory_space<vmem>>, vector<16x64xbf16>
    tpu.vector_store %arg14[%c19, %c0_10], %6 {strides = array<i32>} : memref<54x128xbf16, #tpu.memory_space<vmem>>, vector<16x64xbf16>,
    %c0_11 = arith.constant 0 : index
    %c2 = arith.constant 2 : index
    %c0_12 = arith.constant 0 : index
    %c0_13 = arith.constant 0 : index
    %8 = vector.load %arg1[%c0_11, %c2, %c0_12, %c0_13] : memref<1x3x16x64xbf16, #tpu.memory_space<vmem>>, vector<1x1x16x64xbf16>
    %9 = vector.shape_cast %8 : vector<1x1x16x64xbf16> to vector<16x64xbf16>
    %c37 = arith.constant 37 : index
    %c0_14 = arith.constant 0 : index
    %10 = vector.load %arg14[%c37, %c0_14] : memref<54x128xbf16, #tpu.memory_space<vmem>>, vector<16x64xbf16>
    tpu.vector_store %arg14[%c37, %c0_14], %9 {strides = array<i32>} : memref<54x128xbf16, #tpu.memory_space<vmem>>, vector<16x64xbf16>,
    %c0_15 = arith.constant 0 : index
    %c0_16 = arith.constant 0 : index
    %11 = vector.load %arg4[%c0_15, %c0_16] : memref<52x1xf32, #tpu.memory_space<vmem>>, vector<52x1xf32>
    %cst_17 = arith.constant 0.000000e+00 : f32
    %12 = vector.broadcast %cst_17 : f32 to vector<52x64xf32>
    %c0_18 = arith.constant 0 : index
    %c0_19 = arith.constant 0 : index
    %13 = vector.load %arg14[%c0_18, %c0_19] : memref<54x128xbf16, #tpu.memory_space<vmem>>, vector<52x128xbf16>
    %c0_20 = arith.constant 0 : index
    %c0_21 = arith.constant 0 : index
    %c0_22 = arith.constant 0 : index
    %14 = vector.load %arg2[%c0_20, %c0_21, %c0_22] : memref<3x128x64xbf16, #tpu.memory_space<vmem>>, vector<1x128x64xbf16>
    %15 = vector.shape_cast %14 : vector<1x128x64xbf16> to vector<128x64xbf16>
    %cst_23 = arith.constant dense<0.000000e+00> : vector<52x64xf32>
    %16 = tpu.matmul %13, %15, %cst_23 {dimension_numbers = #tpu.dot_dimension_numbers<[1], [0], [0], [1], [0, 0, 1, 1], [], []>} : vector<52x128xbf16>, vector<128x64xbf16>, vector<52x64xf32> -> vector<52x64xf32>
    %17 = arith.addf %12, %16 : vector<52x64xf32>
    %c1_24 = arith.constant 1 : index
    %c0_25 = arith.constant 0 : index
    %18 = vector.load %arg14[%c1_24, %c0_25] : memref<54x128xbf16, #tpu.memory_space<vmem>>, vector<52x128xbf16>
    %c1_26 = arith.constant 1 : index
    %c0_27 = arith.constant 0 : index
    %c0_28 = arith.constant 0 : index
    %19 = vector.load %arg2[%c1_26, %c0_27, %c0_28] : memref<3x128x64xbf16, #tpu.memory_space<vmem>>, vector<1x128x64xbf16>
    %20 = vector.shape_cast %19 : vector<1x128x64xbf16> to vector<128x64xbf16>
    %cst_29 = arith.constant dense<0.000000e+00> : vector<52x64xf32>
    %21 = tpu.matmul %18, %20, %cst_29 {dimension_numbers = #tpu.dot_dimension_numbers<[1], [0], [0], [1], [0, 0, 1, 1], [], []>} : vector<52x128xbf16>, vector<128x64xbf16>, vector<52x64xf32> -> vector<52x64xf32>
    %22 = arith.addf %17, %21 : vector<52x64xf32>
    %c2_30 = arith.constant 2 : index
    %c0_31 = arith.constant 0 : index
    %23 = vector.load %arg14[%c2_30, %c0_31] : memref<54x128xbf16, #tpu.memory_space<vmem>>, vector<52x128xbf16>
    %c2_32 = arith.constant 2 : index
    %c0_33 = arith.constant 0 : index
    %c0_34 = arith.constant 0 : index
    %24 = vector.load %arg2[%c2_32, %c0_33, %c0_34] : memref<3x128x64xbf16, #tpu.memory_space<vmem>>, vector<1x128x64xbf16>
    %25 = vector.shape_cast %24 : vector<1x128x64xbf16> to vector<128x64xbf16>
    %cst_35 = arith.constant dense<0.000000e+00> : vector<52x64xf32>
    %26 = tpu.matmul %23, %25, %cst_35 {dimension_numbers = #tpu.dot_dimension_numbers<[1], [0], [0], [1], [0, 0, 1, 1], [], []>} : vector<52x128xbf16>, vector<128x64xbf16>, vector<52x64xf32> -> vector<52x64xf32>
    %27 = arith.addf %22, %26 : vector<52x64xf32>
    %cst_36 = arith.constant 0.000000e+00 : f32
    %28 = vector.broadcast %cst_36 : f32 to vector<52x64xf32>
    %29 = arith.maximumf %27, %28 : vector<52x64xf32>
    %30 = vector.broadcast %11 : vector<52x1xf32> to vector<52x64xf32>
    %31 = arith.mulf %29, %30 : vector<52x64xf32>
    %c0_37 = arith.constant 0 : index
    %c0_38 = arith.constant 0 : index
    %32 = vector.load %arg9[%c0_37, %c0_38] : memref<1x64xf32, #tpu.memory_space<vmem>>, vector<1x64xf32>
    %c0_39 = arith.constant 0 : index
    %c0_40 = arith.constant 0 : index
    %33 = vector.load %arg10[%c0_39, %c0_40] : memref<1x64xf32, #tpu.memory_space<vmem>>, vector<1x64xf32>
    %cst_41 = arith.constant dense<0.000000e+00> : vector<64xf32>
    %34 = vector.multi_reduction <add>, %31, %cst_41 [0] : vector<52x64xf32> to vector<64xf32>
    %35 = vector.shape_cast %34 : vector<64xf32> to vector<1x64xf32>
    %36 = arith.mulf %31, %31 : vector<52x64xf32>
    %cst_42 = arith.constant dense<0.000000e+00> : vector<64xf32>
    %37 = vector.multi_reduction <add>, %36, %cst_42 [0] : vector<52x64xf32> to vector<64xf32>
    %38 = vector.shape_cast %37 : vector<64xf32> to vector<1x64xf32>
    %39 = tpu.concatenate %35, %38 in 0 : vector<1x64xf32>, vector<1x64xf32> -> vector<2x64xf32>
    %c0_43 = arith.constant 0 : index
    %c0_44 = arith.constant 0 : index
    %40 = vector.load %arg5[%c0_43, %c0_44] : memref<64x2xf32, #tpu.memory_space<vmem>>, vector<64x2xf32>
    %cst_45 = arith.constant dense<0.000000e+00> : vector<2x2xf32>
    %41 = tpu.matmul %39, %40, %cst_45 {dimension_numbers = #tpu.dot_dimension_numbers<[1], [0], [0], [1], [0, 0, 1, 1], [], []>} : vector<2x64xf32>, vector<64x2xf32>, vector<2x2xf32> -> vector<2x2xf32>
    %cst_46 = arith.constant 6.51041686E-4 : f32
    %42 = vector.broadcast %cst_46 : f32 to vector<2x2xf32>
    %43 = arith.mulf %41, %42 : vector<2x2xf32>
    %c0_47 = arith.constant 0 : index
    %c0_48 = arith.constant 0 : index
    %44 = vector.load %arg6[%c0_47, %c0_48] : memref<2x64xf32, #tpu.memory_space<vmem>>, vector<2x64xf32>
    %cst_49 = arith.constant dense<0.000000e+00> : vector<2x64xf32>
    %45 = tpu.matmul %43, %44, %cst_49 {dimension_numbers = #tpu.dot_dimension_numbers<[1], [0], [0], [1], [0, 0, 1, 1], [], []>} : vector<2x2xf32>, vector<2x64xf32>, vector<2x64xf32> -> vector<2x64xf32>
    %46 = vector.extract_strided_slice %45 {offsets = [0, 0], sizes = [1, 64], strides = [1, 1]} : vector<2x64xf32> to vector<1x64xf32>
    %47 = vector.extract_strided_slice %45 {offsets = [1, 0], sizes = [1, 64], strides = [1, 1]} : vector<2x64xf32> to vector<1x64xf32>
    %48 = arith.mulf %46, %46 : vector<1x64xf32>
    %49 = arith.subf %47, %48 : vector<1x64xf32>
    %cst_50 = arith.constant 0.000000e+00 : f32
    %50 = vector.broadcast %cst_50 : f32 to vector<1x64xf32>
    %51 = arith.maximumf %49, %50 : vector<1x64xf32>
    %cst_51 = arith.constant 9.99999974E-6 : f32
    %52 = vector.broadcast %cst_51 : f32 to vector<1x64xf32>
    %53 = arith.addf %51, %52 : vector<1x64xf32>
    %54 = math.rsqrt %53 : vector<1x64xf32>
    %55 = arith.mulf %54, %32 : vector<1x64xf32>
    %56 = arith.mulf %46, %55 : vector<1x64xf32>
    %57 = arith.subf %33, %56 : vector<1x64xf32>
    %58 = vector.broadcast %55 : vector<1x64xf32> to vector<52x64xf32>
    %59 = arith.mulf %31, %58 : vector<52x64xf32>
    %60 = vector.broadcast %57 : vector<1x64xf32> to vector<52x64xf32>
    %61 = arith.addf %59, %60 : vector<52x64xf32>
    %62 = vector.broadcast %11 : vector<52x1xf32> to vector<52x64xf32>
    %63 = arith.mulf %61, %62 : vector<52x64xf32>
    %64 = arith.truncf %63 : vector<52x64xf32> to vector<52x64xbf16>
    %c1_52 = arith.constant 1 : index
    %c64 = arith.constant 64 : index
    %65 = vector.load %arg14[%c1_52, %c64] : memref<54x128xbf16, #tpu.memory_space<vmem>>, vector<52x64xbf16>
    tpu.vector_store %arg14[%c1_52, %c64], %64 {strides = array<i32>} : memref<54x128xbf16, #tpu.memory_space<vmem>>, vector<52x64xbf16>,
    %cst_53 = arith.constant 0.000000e+00 : f32
    %66 = vector.broadcast %cst_53 : f32 to vector<52x128xf32>
    %c0_54 = arith.constant 0 : index
    %c0_55 = arith.constant 0 : index
    %67 = vector.load %arg14[%c0_54, %c0_55] : memref<54x128xbf16, #tpu.memory_space<vmem>>, vector<52x128xbf16>
    %c0_56 = arith.constant 0 : index
    %c0_57 = arith.constant 0 : index
    %c0_58 = arith.constant 0 : index
    %68 = vector.load %arg3[%c0_56, %c0_57, %c0_58] : memref<3x128x128xbf16, #tpu.memory_space<vmem>>, vector<1x128x128xbf16>
    %69 = vector.shape_cast %68 : vector<1x128x128xbf16> to vector<128x128xbf16>
    %cst_59 = arith.constant dense<0.000000e+00> : vector<52x128xf32>
    %70 = tpu.matmul %67, %69, %cst_59 {dimension_numbers = #tpu.dot_dimension_numbers<[1], [0], [0], [1], [0, 0, 1, 1], [], []>} : vector<52x128xbf16>, vector<128x128xbf16>, vector<52x128xf32> -> vector<52x128xf32>
    %71 = arith.addf %66, %70 : vector<52x128xf32>
    %c1_60 = arith.constant 1 : index
    %c0_61 = arith.constant 0 : index
    %72 = vector.load %arg14[%c1_60, %c0_61] : memref<54x128xbf16, #tpu.memory_space<vmem>>, vector<52x128xbf16>
    %c1_62 = arith.constant 1 : index
    %c0_63 = arith.constant 0 : index
    %c0_64 = arith.constant 0 : index
    %73 = vector.load %arg3[%c1_62, %c0_63, %c0_64] : memref<3x128x128xbf16, #tpu.memory_space<vmem>>, vector<1x128x128xbf16>
    %74 = vector.shape_cast %73 : vector<1x128x128xbf16> to vector<128x128xbf16>
    %cst_65 = arith.constant dense<0.000000e+00> : vector<52x128xf32>
    %75 = tpu.matmul %72, %74, %cst_65 {dimension_numbers = #tpu.dot_dimension_numbers<[1], [0], [0], [1], [0, 0, 1, 1], [], []>} : vector<52x128xbf16>, vector<128x128xbf16>, vector<52x128xf32> -> vector<52x128xf32>
    %76 = arith.addf %71, %75 : vector<52x128xf32>
    %c2_66 = arith.constant 2 : index
    %c0_67 = arith.constant 0 : index
    %77 = vector.load %arg14[%c2_66, %c0_67] : memref<54x128xbf16, #tpu.memory_space<vmem>>, vector<52x128xbf16>
    %c2_68 = arith.constant 2 : index
    %c0_69 = arith.constant 0 : index
    %c0_70 = arith.constant 0 : index
    %78 = vector.load %arg3[%c2_68, %c0_69, %c0_70] : memref<3x128x128xbf16, #tpu.memory_space<vmem>>, vector<1x128x128xbf16>
    %79 = vector.shape_cast %78 : vector<1x128x128xbf16> to vector<128x128xbf16>
    %cst_71 = arith.constant dense<0.000000e+00> : vector<52x128xf32>
    %80 = tpu.matmul %77, %79, %cst_71 {dimension_numbers = #tpu.dot_dimension_numbers<[1], [0], [0], [1], [0, 0, 1, 1], [], []>} : vector<52x128xbf16>, vector<128x128xbf16>, vector<52x128xf32> -> vector<52x128xf32>
    %81 = arith.addf %76, %80 : vector<52x128xf32>
    %cst_72 = arith.constant 0.000000e+00 : f32
    %82 = vector.broadcast %cst_72 : f32 to vector<52x128xf32>
    %83 = arith.maximumf %81, %82 : vector<52x128xf32>
    %84 = vector.broadcast %11 : vector<52x1xf32> to vector<52x128xf32>
    %85 = arith.mulf %83, %84 : vector<52x128xf32>
    %c0_73 = arith.constant 0 : index
    %c0_74 = arith.constant 0 : index
    %86 = vector.load %arg11[%c0_73, %c0_74] : memref<1x128xf32, #tpu.memory_space<vmem>>, vector<1x128xf32>
    %c0_75 = arith.constant 0 : index
    %c0_76 = arith.constant 0 : index
    %87 = vector.load %arg12[%c0_75, %c0_76] : memref<1x128xf32, #tpu.memory_space<vmem>>, vector<1x128xf32>
    %cst_77 = arith.constant dense<0.000000e+00> : vector<128xf32>
    %88 = vector.multi_reduction <add>, %85, %cst_77 [0] : vector<52x128xf32> to vector<128xf32>
    %89 = vector.shape_cast %88 : vector<128xf32> to vector<1x128xf32>
    %90 = arith.mulf %85, %85 : vector<52x128xf32>
    %cst_78 = arith.constant dense<0.000000e+00> : vector<128xf32>
    %91 = vector.multi_reduction <add>, %90, %cst_78 [0] : vector<52x128xf32> to vector<128xf32>
    %92 = vector.shape_cast %91 : vector<128xf32> to vector<1x128xf32>
    %93 = tpu.concatenate %89, %92 in 0 : vector<1x128xf32>, vector<1x128xf32> -> vector<2x128xf32>
    %c0_79 = arith.constant 0 : index
    %c0_80 = arith.constant 0 : index
    %94 = vector.load %arg7[%c0_79, %c0_80] : memref<128x4xf32, #tpu.memory_space<vmem>>, vector<128x4xf32>
    %cst_81 = arith.constant dense<0.000000e+00> : vector<2x4xf32>
    %95 = tpu.matmul %93, %94, %cst_81 {dimension_numbers = #tpu.dot_dimension_numbers<[1], [0], [0], [1], [0, 0, 1, 1], [], []>} : vector<2x128xf32>, vector<128x4xf32>, vector<2x4xf32> -> vector<2x4xf32>
    %cst_82 = arith.constant 6.51041686E-4 : f32
    %96 = vector.broadcast %cst_82 : f32 to vector<2x4xf32>
    %97 = arith.mulf %95, %96 : vector<2x4xf32>
    %c0_83 = arith.constant 0 : index
    %c0_84 = arith.constant 0 : index
    %98 = vector.load %arg8[%c0_83, %c0_84] : memref<4x128xf32, #tpu.memory_space<vmem>>, vector<4x128xf32>
    %cst_85 = arith.constant dense<0.000000e+00> : vector<2x128xf32>
    %99 = tpu.matmul %97, %98, %cst_85 {dimension_numbers = #tpu.dot_dimension_numbers<[1], [0], [0], [1], [0, 0, 1, 1], [], []>} : vector<2x4xf32>, vector<4x128xf32>, vector<2x128xf32> -> vector<2x128xf32>
    %100 = vector.extract_strided_slice %99 {offsets = [0, 0], sizes = [1, 128], strides = [1, 1]} : vector<2x128xf32> to vector<1x128xf32>
    %101 = vector.extract_strided_slice %99 {offsets = [1, 0], sizes = [1, 128], strides = [1, 1]} : vector<2x128xf32> to vector<1x128xf32>
    %102 = arith.mulf %100, %100 : vector<1x128xf32>
    %103 = arith.subf %101, %102 : vector<1x128xf32>
    %cst_86 = arith.constant 0.000000e+00 : f32
    %104 = vector.broadcast %cst_86 : f32 to vector<1x128xf32>
    %105 = arith.maximumf %103, %104 : vector<1x128xf32>
    %cst_87 = arith.constant 9.99999974E-6 : f32
    %106 = vector.broadcast %cst_87 : f32 to vector<1x128xf32>
    %107 = arith.addf %105, %106 : vector<1x128xf32>
    %108 = math.rsqrt %107 : vector<1x128xf32>
    %109 = arith.mulf %108, %86 : vector<1x128xf32>
    %110 = arith.mulf %100, %109 : vector<1x128xf32>
    %111 = arith.subf %87, %110 : vector<1x128xf32>
    %112 = vector.broadcast %109 : vector<1x128xf32> to vector<52x128xf32>
    %113 = arith.mulf %85, %112 : vector<52x128xf32>
    %114 = vector.broadcast %111 : vector<1x128xf32> to vector<52x128xf32>
    %115 = arith.addf %113, %114 : vector<52x128xf32>
    %116 = vector.extract_strided_slice %115 {offsets = [0, 0], sizes = [16, 128], strides = [1, 1]} : vector<52x128xf32> to vector<16x128xf32>
    %117 = arith.truncf %116 : vector<16x128xf32> to vector<16x128xbf16>
    %c0_88 = arith.constant 0 : index
    %c0_89 = arith.constant 0 : index
    %c0_90 = arith.constant 0 : index
    %c0_91 = arith.constant 0 : index
    %118 = vector.load %arg13[%c0_88, %c0_89, %c0_90, %c0_91] : memref<1x3x16x128xbf16, #tpu.memory_space<vmem>>, vector<1x1x16x128xbf16>
    %119 = vector.shape_cast %118 : vector<1x1x16x128xbf16> to vector<16x128xbf16>
    %120 = vector.shape_cast %117 : vector<16x128xbf16> to vector<1x1x16x128xbf16>
    tpu.vector_store %arg13[%c0_88, %c0_89, %c0_90, %c0_91], %120 {strides = array<i32>} : memref<1x3x16x128xbf16, #tpu.memory_space<vmem>>, vector<1x1x16x128xbf16>,
    %121 = vector.extract_strided_slice %115 {offsets = [18, 0], sizes = [16, 128], strides = [1, 1]} : vector<52x128xf32> to vector<16x128xf32>
    %122 = arith.truncf %121 : vector<16x128xf32> to vector<16x128xbf16>
    %c0_92 = arith.constant 0 : index
    %c1_93 = arith.constant 1 : index
    %c0_94 = arith.constant 0 : index
    %c0_95 = arith.constant 0 : index
    %123 = vector.load %arg13[%c0_92, %c1_93, %c0_94, %c0_95] : memref<1x3x16x128xbf16, #tpu.memory_space<vmem>>, vector<1x1x16x128xbf16>
    %124 = vector.shape_cast %123 : vector<1x1x16x128xbf16> to vector<16x128xbf16>
    %125 = vector.shape_cast %122 : vector<16x128xbf16> to vector<1x1x16x128xbf16>
    tpu.vector_store %arg13[%c0_92, %c1_93, %c0_94, %c0_95], %125 {strides = array<i32>} : memref<1x3x16x128xbf16, #tpu.memory_space<vmem>>, vector<1x1x16x128xbf16>,
    %126 = vector.extract_strided_slice %115 {offsets = [36, 0], sizes = [16, 128], strides = [1, 1]} : vector<52x128xf32> to vector<16x128xf32>
    %127 = arith.truncf %126 : vector<16x128xf32> to vector<16x128xbf16>
    %c0_96 = arith.constant 0 : index
    %c2_97 = arith.constant 2 : index
    %c0_98 = arith.constant 0 : index
    %c0_99 = arith.constant 0 : index
    %128 = vector.load %arg13[%c0_96, %c2_97, %c0_98, %c0_99] : memref<1x3x16x128xbf16, #tpu.memory_space<vmem>>, vector<1x1x16x128xbf16>
    %129 = vector.shape_cast %128 : vector<1x1x16x128xbf16> to vector<16x128xbf16>
    %130 = vector.shape_cast %127 : vector<16x128xbf16> to vector<1x1x16x128xbf16>
    tpu.vector_store %arg13[%c0_96, %c2_97, %c0_98, %c0_99], %130 {strides = array<i32>} : memref<1x3x16x128xbf16, #tpu.memory_space<vmem>>, vector<1x1x16x128xbf16>,
    return
  }
  func.func @transform_0(%arg0: i32) -> (i32, i32, i32, i32) {
    %c0_i32 = arith.constant 0 : i32
    %c0_i32_0 = arith.constant 0 : i32
    %c0_i32_1 = arith.constant 0 : i32
    %c0_i32_2 = arith.constant 0 : i32
    return %arg0, %c0_i32, %c0_i32_0, %c0_i32_1 : i32, i32, i32, i32
  }
  func.func @transform_1(%arg0: i32) -> (i32, i32, i32) {
    %c0_i32 = arith.constant 0 : i32
    %c0_i32_0 = arith.constant 0 : i32
    %c0_i32_1 = arith.constant 0 : i32
    %c0_i32_2 = arith.constant 0 : i32
    return %c0_i32, %c0_i32_0, %c0_i32_1 : i32, i32, i32
  }
  func.func @transform_2(%arg0: i32) -> (i32, i32, i32) {
    %c0_i32 = arith.constant 0 : i32
    %c0_i32_0 = arith.constant 0 : i32
    %c0_i32_1 = arith.constant 0 : i32
    %c0_i32_2 = arith.constant 0 : i32
    return %c0_i32, %c0_i32_0, %c0_i32_1 : i32, i32, i32
  }
  func.func @transform_3(%arg0: i32) -> (i32, i32) {
    %c0_i32 = arith.constant 0 : i32
    %c0_i32_0 = arith.constant 0 : i32
    %c0_i32_1 = arith.constant 0 : i32
    return %c0_i32, %c0_i32_0 : i32, i32
  }
  func.func @transform_4(%arg0: i32) -> (i32, i32) {
    %c0_i32 = arith.constant 0 : i32
    %c0_i32_0 = arith.constant 0 : i32
    %c0_i32_1 = arith.constant 0 : i32
    return %c0_i32, %c0_i32_0 : i32, i32
  }
  func.func @transform_5(%arg0: i32) -> (i32, i32) {
    %c0_i32 = arith.constant 0 : i32
    %c0_i32_0 = arith.constant 0 : i32
    %c0_i32_1 = arith.constant 0 : i32
    return %c0_i32, %c0_i32_0 : i32, i32
  }
  func.func @transform_6(%arg0: i32) -> (i32, i32) {
    %c0_i32 = arith.constant 0 : i32
    %c0_i32_0 = arith.constant 0 : i32
    %c0_i32_1 = arith.constant 0 : i32
    return %c0_i32, %c0_i32_0 : i32, i32
  }
  func.func @transform_7(%arg0: i32) -> (i32, i32) {
    %c0_i32 = arith.constant 0 : i32
    %c0_i32_0 = arith.constant 0 : i32
    %c0_i32_1 = arith.constant 0 : i32
    return %c0_i32, %c0_i32_0 : i32, i32
  }
  func.func @transform_8(%arg0: i32) -> (i32, i32) {
    %c0_i32 = arith.constant 0 : i32
    %c0_i32_0 = arith.constant 0 : i32
    %c0_i32_1 = arith.constant 0 : i32
    return %c0_i32, %c0_i32_0 : i32, i32
  }
  func.func @transform_9(%arg0: i32) -> (i32, i32) {
    %c0_i32 = arith.constant 0 : i32
    %c0_i32_0 = arith.constant 0 : i32
    %c0_i32_1 = arith.constant 0 : i32
    return %c0_i32, %c0_i32_0 : i32, i32
  }
  func.func @transform_10(%arg0: i32) -> (i32, i32) {
    %c0_i32 = arith.constant 0 : i32
    %c0_i32_0 = arith.constant 0 : i32
    %c0_i32_1 = arith.constant 0 : i32
    return %c0_i32, %c0_i32_0 : i32, i32
  }
  func.func @transform_11(%arg0: i32) -> (i32, i32) {
    %c0_i32 = arith.constant 0 : i32
    %c0_i32_0 = arith.constant 0 : i32
    %c0_i32_1 = arith.constant 0 : i32
    return %c0_i32, %c0_i32_0 : i32, i32
  }
  func.func @transform_12(%arg0: i32) -> (i32, i32, i32, i32) {
    %c0_i32 = arith.constant 0 : i32
    %c0_i32_0 = arith.constant 0 : i32
    %c0_i32_1 = arith.constant 0 : i32
    %c0_i32_2 = arith.constant 0 : i32
    return %arg0, %c0_i32, %c0_i32_0, %c0_i32_1 : i32, i32, i32, i32
  }
}

</mosaic_0001>

<bundles_post_ra>
// kernel: tpu_custom_call.1
= control target key start
LH: loop header
LB: loop body
LE: loop exit
PB: predicated region body
PF: predicated region fallthrough
CT: control target
= control target key end

     0   :  { %s3844_s0 = inlined_call_operand.vmem [shape: bf16[2,3,16,64], index: 0, kind: input, shape index: {}]   ;;  %s3845_s1 = inlined_call_operand.vmem [shape: bf16[3,128,64], index: 1, kind: input, shape index: {}]   ;;  %s3846_s2 = inlined_call_operand.vmem [shape: bf16[3,128,128], index: 2, kind: input, shape index: {}]   ;;  %s3847_s3 = inlined_call_operand.vmem [shape: f32[52,1], index: 3, kind: input, shape index: {}]   ;;  %s3848_s4 = inlined_call_operand.vmem [shape: f32[64,2], index: 4, kind: input, shape index: {}]   ;;  %s3849_s5 = inlined_call_operand.vmem [shape: f32[2,64], index: 5, kind: input, shape index: {}]   ;;  %s3850_s6 = inlined_call_operand.vmem [shape: f32[128,4], index: 6, kind: input, shape index: {}]   ;;  %s3851_s7 = inlined_call_operand.vmem [shape: f32[4,128], index: 7, kind: input, shape index: {}]   ;;  %s3852_s8 = inlined_call_operand.vmem [shape: f32[1,64], index: 8, kind: input, shape index: {}]   ;;  %s3853_s9 = inlined_call_operand.vmem [shape: f32[1,64], index: 9, kind: input, shape index: {}]   ;;  %s3854_s10 = inlined_call_operand.vmem [shape: f32[1,128], index: 10, kind: input, shape index: {}]   ;;  %s3855_s11 = inlined_call_operand.vmem [shape: f32[1,128], index: 11, kind: input, shape index: {}]   ;;  %s3856_s12 = inlined_call_operand.hbm [shape: bf16[2,3,16,128], index: 12, kind: output, shape index: {}]  }
   0x1   :  { %3858 = sst [smem:[#allocation6_spill]] %s3844_s0 }
   0x2   :  { %17 = vsyncpa [#allocation4], 0 }
   0x3   :  { %19 = vsyncpa [#allocation4 + $0x1], 0  ;;  %s3136_s21 = smov 0   ;;  %s3138_s22 = smov 0  }
   0x4   :  { %s3140_s23 = smov 0   ;;  %s3142_s24 = smov 0  }
   0x5 LB: > { %s3157_s25 = sadd.s32 4294967295, %s3062_s24   ;;  %s2325_s26 = sadd.s32 4294967294, %s3062_s24   ;;  %s3062_s24 = sphi %s3142_s24, %s3884_s24   ;;  %s3058_s23 = sphi %s3140_s23, %s3883_s23   ;;  %s3054_s22 = sphi %s3138_s22, %s3882_s22   ;;  %s3050_s21 = sphi %s3136_s21, %s3881_s21  }
   0x6   : > { %s3161_s27 = sadd.s32 1, %s3062_s24   ;;  %s289_s28 = sadd.s32 1, %s3058_s23 }
   0x7   : > { %s286_s29 = ssub.s32 %s3062_s24, %s3161_s27  ;;  %p299_p0 = scmp.ne.s32.totalorder %s3058_s23, %s3054_s22 }
   0x8   : > { %p287_p1 = scmp.eq.s32.totalorder %s286_s29, 0  ;;  %p300_p2 = scmp.eq.s32.totalorder %s3157_s25, 1 }
   0x9   : > { %p305_p3 = scmp.ne.s32.totalorder %s3054_s22, %s3050_s21  ;;  %p306_p4 = scmp.eq.s32.totalorder %s2325_s26, 1 }
   0xa   : > { %s3172_s30 = scalar_select %p287_p1, %s3058_s23, %s289_s28  }
   0xb   : > { %p3174_p5 = por %p300_p2, %p299_p0  ;;  %p3178_p6 = por %p306_p4, %p305_p3 }
   0xc   : > { %p2328_p7 = scmp.ge.s32.totalorder %s3062_s24, 1  ;;  %p365_p8 = scmp.lt.s32.totalorder %s3062_s24, 3 }
   0xe   : > { %p366_p9 = pnand %p2328_p7, %p365_p8 }
   0xf   : > { %v2937_v0 = vld [vmem:[%s3845_s1 + $0x40] sm:$0xff] (!%p366_p9)   ;;  %p407_p10 = scmp.lt.s32.totalorder (!%p366_p9), %s3157_s25, 1  ;;  %v2938_v1 = vld [vmem:[%s3845_s1 + $0x48] sm:$0xff] (!%p366_p9)   ;;  %v3064_v2 = vmov (!%p366_p9), 0   ;;  %v2939_v3 = vld [vmem:[%s3845_s1 + $0x50] sm:$0xff] (!%p366_p9)   ;;  %s3861_s0 = sld [smem:[#allocation6_spill]] (!%p366_p9) }
  0x10   : > { %369 = sbr.rel (%p366_p9) target bundleno = 1766 (0x6e6), region = 68  ;;  %2611 = vmatprep.subr.bf16.mxu0 (!%p366_p9), %v2937_v0  ;;  %413 = vst [vmem:[#allocation2] sm:$0xf] (!%p366_p9), %v3064_v2  ;;  %414 = vst [vmem:[#allocation2 + $0x4] sm:$0xf] (!%p366_p9), %v3064_v2  ;;  %2935 = vset.pattern.permute.xlu0 (!%p366_p9), %v3064_v2  ;;  %v2940_v4 = vld [vmem:[%s3845_s1 + $0x58] sm:$0xff] (!%p366_p9)  }
  0x11   : > { %415 = vst [vmem:[#allocation2 + $0x8] sm:$0xf] (!%p366_p9), %v3064_v2  ;;  %416 = vst [vmem:[#allocation2 + $0xc] sm:$0xf] (!%p366_p9), %v3064_v2  ;;  %2612 = vmatpush3.bf16.msra.mxu0 (!%p366_p9), %v2937_v0  ;;  %2936 = vset.pattern.permute.xlu1 (!%p366_p9), %v3064_v2  ;;  %vm445_vm0 = vcmask (!%p366_p9), 519168   ;;  %vm453_vm1 = vcmask (!%p366_p9), 516096  }
  0x12   : > { %417 = vst [vmem:[#allocation2 + $0x10] sm:$0xf] (!%p366_p9), %v3064_v2  ;;  %418 = vst [vmem:[#allocation2 + $0x14] sm:$0xf] (!%p366_p9), %v3064_v2  ;;  %2613 = vmatprep.subr.bf16.mxu0 (!%p366_p9), %v2938_v1  ;;  %vm486_vm2 = vcmask (!%p366_p9), 519169   ;;  %v2941_v10 = vld [vmem:[%s3845_s1 + $0x60] sm:$0xff] (!%p366_p9)  }
  0x13   : > { %419 = vst [vmem:[#allocation2 + $0x18] sm:$0x7] (!%p366_p9), %v3064_v2  ;;  %vm422_vm3 = vsmask.f32 (!%p366_p9), 256  ;;  %vm423_vm4 = vsmask.f32 (!%p366_p9), 4368 }
  0x14   : > { %vm446_vm5 = vsmask.f32 (!%p366_p9), 7938  ;;  %vm3208_vm6 = vmand (!%p366_p9), %vm453_vm1, %vm422_vm3  ;;  %vm493_vm7 = vcmask (!%p366_p9), 517120   ;;  %vm526_vm9 = vcmask (!%p366_p9), 519170   ;;  %vm461_vm11 = vsmask.f32 (!%p366_p9), 1280 }
  0x15   : > { %2614 = vmatpush3.bf16.msra.mxu0 (!%p366_p9), %v2938_v1  ;;  %vm3212_vm8 = vmor (!%p366_p9), %vm422_vm3, %vm423_vm4  ;;  %vm462_vm12 = vsmask.f32 (!%p366_p9), 5392  ;;  %v2942_v29 = vld [vmem:[%s3845_s1 + $0x68] sm:$0xff] (!%p366_p9)   ;;  %vm487_vm13 = vsmask.f32 (!%p366_p9), 7942  ;;  %v2943_v50 = vld [vmem:[%s3845_s1 + $0x70] sm:$0xff] (!%p366_p9)  }
  0x16   : > { %2615 = vmatprep.subr.bf16.mxu0 (!%p366_p9), %v2939_v3  ;;  %vm3219_vm10 = vmand (!%p366_p9), %vm445_vm0, %vm446_vm5  ;;  %vm501_vm15 = vsmask.f32 (!%p366_p9), 2304  ;;  %vm502_vm1 = vsmask.f32 (!%p366_p9), 6416  ;;  %vm527_vm4 = vsmask.f32 (!%p366_p9), 7946 }
  0x17   : > { %s408_s19 = scalar_select %p407_p10, %s3157_s25, 1  ;;  %v448_v12 = vld [vmem:[#allocation2] sm:$0xf]  ;;  %vm3237_vm14 = vmand %vm486_vm2, %vm487_vm13  ;;  %v2944_v59 = vld [vmem:[%s3845_s1 + $0x78] sm:$0xff]   ;;  %vm3066_vm13 = vmmov 0  }
  0x18   : > { %v455_v17 = vld [vmem:[#allocation2 + $0x8] sm:$0x1]  ;;  %v489_v40 = vld [vmem:[#allocation2 + $0x8] sm:$0xe]  ;;  %vm3243_vm3 = vmor %vm461_vm11, %vm462_vm12  ;;  %vm892_vm12 = vcmask 1046528   ;;  %s3857_s17 = smov 64  }
  0x19   : > { %s2888_s28 = smul.u32 24, %s408_s19  ;;  %2616 = vmatpush3.bf16.msra.mxu0 %v2939_v3  ;;  %v495_v44 = vld [vmem:[#allocation2 + $0x10] sm:$0x3]  ;;  %vm3249_vm2 = vmand %vm493_vm7, %vm461_vm11  ;;  %v529_v55 = vld [vmem:[#allocation2 + $0x10] sm:$0xc]  ;;  %vm533_vm7 = vcmask 518144  }
  0x1a   : > { %2617 = vmatprep.subr.bf16.mxu0 %v2940_v4  ;;  %vm604_vm11 = vsmask.f32 7424  ;;  %v542_v39 = vld [vmem:[%s3847_s3 + $0x20] sm:$0xff]  ;;  %v2956_v47 = vld [vmem:[%s3845_s1 + $0x38] sm:$0xff]   ;;  %s404_s16 = sand.u32 1, %s3054_s22   ;;  %s2889_s20 = smul.u32 384, %s3157_s25 }
  0x1b   : > { %s3201_s18 = scalar_lea.vmem %s3861_s0, %s2888_s28  ;;  %s3801_s15 = scalar_lea.sflag [#allocation4], %s404_s16 }
  0x1c   : > { %v420_v5 = vld [vmem:[%s3201_s18] sm:$0xf]  ;;  %v421_v6 = vld [vmem:[%s3201_s18 + $0x4] sm:$0xf]  ;;  %v2330_v18 = vld [vmem:[%s3201_s18 + $0x8] sm:$0xf]  ;;  %s3791_s25 = scalar_lea.hbm %s3856_s12, %s2889_s20 }
  0x1d   : > { %v426_v7 = vshrl.u32 %v420_v5, 16  ;;  %v429_v8 = vshll.u32 %v420_v5, 16  ;;  %v434_v9 = vshrl.u32 %v421_v6, 16  ;;  %v437_v11 = vshll.u32 %v421_v6, 16  ;;  %v2331_v20 = vld [vmem:[%s3201_s18 + $0xc] sm:$0xf]  ;;  %2618 = vmatpush3.bf16.msra.mxu0 %v2940_v4 }
  0x1e   : > { %v465_v25 = vshrl.u32 %v2330_v18, 16  ;;  %v468_v26 = vshll.u32 %v2330_v18, 16  ;;  %v474_v27 = vshrl.u32 %v2331_v20, 16  ;;  %v477_v28 = vshll.u32 %v2331_v20, 16  ;;  %v2332_v33 = vld [vmem:[%s3201_s18 + $0x10] sm:$0xf]  ;;  %2619 = vmatprep.subr.bf16.mxu0 %v2941_v10 }
  0x1f   : > { %v428_v15 = vrot.slane %v426_v7, 7  ;;  %v436_v16 = vrot.slane %v434_v9, 7  ;;  %v2333_v38 = vld [vmem:[%s3201_s18 + $0x14] sm:$0xf]  ;;  %v505_v45 = vshrl.u32 %v2332_v33, 16  ;;  %v508_v46 = vshll.u32 %v2332_v33, 16 }
  0x20   : > { %v467_v34 = vrot.slane %v465_v25, 6  ;;  %v470_v35 = vrot.slane %v468_v26, 7  ;;  %v476_v36 = vrot.slane %v474_v27, 6  ;;  %v479_v37 = vrot.slane %v477_v28, 7  ;;  %v2947_v9 = vld [vmem:[%s3845_s1] sm:$0xff]   ;;  %v2949_v28 = vld [vmem:[%s3845_s1 + $0x8] sm:$0xff]  }
  0x21   : > { %v431_v21 = vor.u32 %v429_v8, %v428_v15  ;;  %v432_v22 = vrot.slane %v428_v15, 4  ;;  %v439_v23 = vor.u32 %v437_v11, %v436_v16  ;;  %v441_v24 = vrot.slane %v436_v16, 4  ;;  %2620 = vmatpush3.bf16.msra.mxu0 %v2941_v10  ;;  %v535_v8 = vld [vmem:[#allocation2 + $0x18] sm:$0x7]  ;;  %s2887_s18 = smul.u32 24, %s404_s16 }
  0x22   : > { %v471_v42 = vor.u32 %v470_v35, %v467_v34  ;;  %v480_v43 = vor.u32 %v479_v37, %v476_v36  ;;  %v514_v48 = vshrl.u32 %v2333_v38, 16  ;;  %v517_v49 = vshll.u32 %v2333_v38, 16  ;;  %2621 = vmatprep.subr.bf16.mxu0 %v2942_v29  ;;  %v540_v34 = vld [vmem:[%s3847_s3 + $0x10] sm:$0xff]  ;;  %v539_v37 = vld [vmem:[%s3847_s3 + $0x8] sm:$0xff]  ;;  %v541_v38 = vld [vmem:[%s3847_s3 + $0x18] sm:$0xff] }
  0x23   : > { %v440_v30 = vsel %vm3212_vm8, %v432_v22, %v439_v23  ;;  %v449_v31 = vsel %vm3219_vm10, %v431_v21, %v448_v12  ;;  %v456_v32 = vsel %vm3208_vm6, %v441_v24, %v455_v17  ;;  %v507_v54 = vrot.slane %v505_v45, 5  ;;  %vm3267_vm6 = vmand %vm526_vm9, %vm527_vm4  ;;  %v2950_v35 = vld [vmem:[%s3845_s1 + $0x10] sm:$0xff]   ;;  %1042 = vperm.xlu1 %2936, %v540_v34   ;;  %v2953_v45 = vld [vmem:[%s3845_s1 + $0x28] sm:$0xff]   ;;  %s406_s19 = scalar_lea.vmem [#allocation3], %s2887_s18  ;;  %s3069_s18 = smov [#allocation3]  }
  0x24   : > { %450 = vst [vmem:[#allocation2] sm:$0xf] %v449_v31  ;;  %452 = vst.msk [vmem:[#allocation2 + $0x4] sm:$0xf] %vm445_vm0, %v440_v30  ;;  %v472_v51 = vrot.slane %v471_v42, 4  ;;  %v490_v52 = vsel %vm3237_vm14, %v471_v42, %v489_v40  ;;  %v482_v53 = vrot.slane %v480_v43, 4 }
  0x25   : > { %457 = vst [vmem:[#allocation2 + $0x8] sm:$0x1] %v456_v32  ;;  %491 = vst [vmem:[#allocation2 + $0x8] sm:$0xe] %v490_v52  ;;  %v510_v56 = vrot.slane %v508_v46, 6  ;;  %v516_v57 = vrot.slane %v514_v48, 5  ;;  %2622 = vmatpush3.bf16.msra.mxu0 %v2942_v29 }
  0x26   : > { %v519_v58 = vrot.slane %v517_v49, 6  ;;  %v481_v60 = vsel %vm3243_vm3, %v472_v51, %v480_v43  ;;  %v496_v61 = vsel %vm3249_vm2, %v482_v53, %v495_v44  ;;  %2623 = vmatprep.subr.bf16.mxu0 %v2943_v50  ;;  %vm503_vm9 = vmor %vm501_vm15, %vm502_vm1  ;;  %v538_v32 = vld [vmem:[%s3847_s3] sm:$0xff]  ;;  %v2951_v40 = vld [vmem:[%s3845_s1 + $0x18] sm:$0xff]   ;;  %vm1074_vm14 = vcmask 523264   ;;  %s2263_s26 = sshll.u32 %s406_s19, 4  ;;  %s3004_s20 = sshll.u32 %s3069_s18, 4  ;;  %s3793_s26 = int_to_ptr.vmem [resolvable:$true] %s2263_s26  ;;  %s3005_s20 = int_to_ptr.vmem [resolvable:$false] %s3004_s20 }
  0x27   : > { %492 = vst.msk [vmem:[#allocation2 + $0xc] sm:$0xf] %vm445_vm0, %v481_v60  ;;  %497 = vst [vmem:[#allocation2 + $0x10] sm:$0x3] %v496_v61  ;;  %v511_v1 = vor.u32 %v510_v56, %v507_v54  ;;  %1032 = vperm.xlu0 %2935, %v538_v32   ;;  %1047 = vperm.xlu1 %2936, %v541_v38   ;;  %v543_v42 = vld [vmem:[%s3847_s3 + $0x28] sm:$0xff]  ;;  %v2952_v44 = vld [vmem:[%s3845_s1 + $0x20] sm:$0xff]   ;;  %p3007_p0 = scmp.lt.s32.totalorder %s3793_s26, %s3005_s20 }
  0x28   : > { %v520_v2 = vor.u32 %v519_v58, %v516_v57  ;;  %vm534_vm10 = vmand %vm533_vm7, %vm501_vm15  ;;  %v544_v43 = vld [vmem:[%s3847_s3 + $0x30] sm:$0xf]  ;;  %v2957_v48 = vld [vmem:[%s3845_s1 + $0x80] sm:$0xff]   ;;  %vm1120_vm1 = vcmask 1040384   ;;  %vm1209_vm3 = vcmask 1041408   ;;  %vm1438_vm2 = vcmask 1043968  }
  0x29   : > { %v512_v4 = vrot.slane %v511_v1, 4  ;;  %v530_v5 = vsel %vm3267_vm6, %v511_v1, %v529_v55  ;;  %2624 = vmatpush3.bf16.msra.mxu0 %v2943_v50  ;;  %v2955_v46 = vld [vmem:[%s3845_s1 + $0x30] sm:$0xff]   ;;  %v2958_v50 = vld [vmem:[%s3845_s1 + $0x88] sm:$0xff]   ;;  %v2960_v56 = vld [vmem:[%s3845_s1 + $0x98] sm:$0xff]   ;;  %vm2068_vm6 = vcmask 31744   ;;  %vm2235_vm7 = vcmask 1045508  }
  0x2a   : > { %v522_v6 = vrot.slane %v520_v2, 4  ;;  %531 = vst [vmem:[#allocation2 + $0x10] sm:$0xc] %v530_v5  ;;  %2625 = vmatprep.subr.bf16.mxu0 %v2944_v59  ;;  %v2959_v52 = vld [vmem:[%s3845_s1 + $0x90] sm:$0xff]   ;;  %v2961_v58 = vld [vmem:[%s3845_s1 + $0xa0] sm:$0xff]   ;;  %v2965_v61 = vld [vmem:[%s3845_s1 + $0xb8] sm:$0xff]  }
  0x2b   : > { %v3272_v63 = vld [vmem:[#allocation2] sm:$0xf]  ;;  %v3274_v0 = vld [vmem:[#allocation2 + $0x4] sm:$0xf]  ;;  %v521_v10 = vsel %vm503_vm9, %v512_v4, %v520_v2  ;;  %1037 = vperm.xlu0 %2935, %v539_v37   ;;  %1057 = vperm.xlu1 %2936, %v543_v42   ;;  %v2964_v60 = vld [vmem:[%s3845_s1 + $0xb0] sm:$0xff]   ;;  %vm2209_vm9 = vcmask 1042432  }
  0x2c   : > { %v3278_v3 = vcombine.low %v3272_v63, %v3274_v0  ;;  %v536_v11 = vsel %vm534_vm10, %v522_v6, %v535_v8  ;;  %532 = vst.msk [vmem:[#allocation2 + $0x14] sm:$0xf] %vm445_vm0, %v521_v10  ;;  %v871_v49 = vld [vmem:[#allocation2] sm:$0xe]  ;;  %v1123_v4 = vld [vmem:[%s3848_s4 + $0x8] sm:$0xff]  ;;  %v3065_v6 = vmov 0.0|0.0   ;;  %vm1439_vm4 = vmand %vm1438_vm2, %vm446_vm5 }
  0x2d   : > { %537 = vst [vmem:[#allocation2 + $0x18] sm:$0x7] %v536_v11  ;;  %2626 = vmatpush3.bf16.msra.mxu0 %v2944_v59  ;;  %v2387_v51 = vcombine.low %v871_v49, %v3274_v0  ;;  %v2962_v59 = vld [vmem:[%s3845_s1 + $0xa8] sm:$0xff]   ;;  %2819 = vmatprep.subr.bf16.mxu1 %v3065_v6  ;;  %v1125_v8 = vld [vmem:[%s3848_s4 + $0x18] sm:$0xff]  ;;  %v1126_v10 = vld [vmem:[%s3848_s4 + $0x20] sm:$0xff]  ;;  %vm2210_vm10 = vcmask 1046532  }
  0x2e   : > { %v608_v7 = vshll.u32 %v3278_v3, 16  ;;  %v606_v12 = vshrl.u32 %v3278_v3, 16  ;;  %v3291_v15 = vld [vmem:[#allocation2 + $0x8] sm:$0xff]   ;;  %2635 = vmatprep.subr.bf16.mxu0 %v2947_v9  ;;  %s3006_s28 = scalar_lea.vmem %s3005_s20, 768 }
  0x2f   : > { %v613_v17 = vshll.u32 %v3291_v15, 16  ;;  %v617_v18 = vshrl.u32 %v3291_v15, 16  ;;  %1052 = vperm.xlu0 %2935, %v542_v39   ;;  %v893_v53 = vrot.slane %v2387_v51, 1  ;;  %v894_v54 = vrot.slane %v3291_v15, 1  ;;  %v1127_v11 = vld [vmem:[%s3848_s4 + $0x28] sm:$0xff] }
  0x30   : > { %v610_v13 = vrot.slane %v608_v7, 1  ;;  %v1124_v7 = vld [vmem:[%s3848_s4 + $0x10] sm:$0xff] }
  0x31   : > { %v615_v19 = vrot.slane %v613_v17, 1  ;;  %v895_v57 = vsel %vm892_vm12, %v893_v53, %v894_v54 }
  0x32   : > { %v611_v16 = vor.u32 %v610_v13, %v606_v12  ;;  %v3067_v12 = vmov 0.0   ;;  %v2826_v13 = vpack.c.bf16 %v1127_v11, %v1126_v10 }
  0x33   : > { %v3295_v20 = vld [vmem:[#allocation2 + $0x10] sm:$0xff]   ;;  %v619_v23 = vor.u32 %v617_v18, %v615_v19  ;;  %1062 = vperm.xlu0 %2935, %v544_v43   ;;  %2699 = vmatprep.mubr.msk.f32.mxu1 %vm3066_vm13, %v3067_v12 }
  0x34   : > { %v616_v21 = vsel %vm604_vm11, %v611_v16, %v615_v19  ;;  %v3298_v22 = vld [vmem:[#allocation2 + $0x18] ss:$0 sps:$4 sm:$0x77]   ;;  %v621_v24 = vshll.u32 %v3295_v20, 16  ;;  %v625_v25 = vshrl.u32 %v3295_v20, 16  ;;  %v896_v62 = vrot.slane %v3295_v20, 1 }
  0x35   : > { %2627 = vmatprep.mubr.bf16.mxu0 %v616_v21  ;;  %v629_v26 = vshll.u32 %v3298_v22, 16  ;;  %v633_v33 = vshrl.u32 %v3298_v22, 16  ;;  %v2963_v55 = vld [vmem:[#allocation2 + $0x18] ss:$0 sps:$4 sm:$0x33]   ;;  %v898_v0 = vrot.slane %v3298_v22, 1 }
  0x36   : > { %v623_v27 = vrot.slane %v621_v24, 1  ;;  %v897_v1 = vsel %vm892_vm12, %v894_v54, %v896_v62  ;;  %v1129_v16 = vld [vmem:[%s3848_s4 + $0x38] sm:$0xff] }
  0x37   : > { %v631_v29 = vrot.slane %v629_v26, 1  ;;  %v899_v2 = vsel %vm892_vm12, %v896_v62, %v898_v0 }
  0x38   : > { %v624_v30 = vsel %vm604_vm11, %v619_v23, %v623_v27  ;;  %v627_v31 = vor.u32 %v625_v25, %v623_v27 }
  0x39   : > { %2628 = vmatmul.mubr.bf16.vlgmr.msra.gmra.mrb[0].mxu0 %v624_v30  ;;  %v635_v41 = vor.u32 %v633_v33, %v631_v29 }
  0x3a   : > { %2636 = vmatpush3.bf16.msra.mxu0 %v2947_v9  ;;  %v632_v36 = vsel %vm604_vm11, %v627_v31, %v631_v29  ;;  %v2823_v9 = vpack.c.bf16 %v1125_v8, %v1124_v7 }
  0x3b   : > { %2637 = vmatprep.subr.bf16.mxu0 %v2949_v28  ;;  %2631 = vmatprep.mubr.bf16.mxu0 %v632_v36 }
  0x3e   : > { %2638 = vmatpush3.bf16.msra.mxu0 %v2949_v28 }
  0x3f   : > { %2639 = vmatprep.subr.bf16.mxu0 %v2950_v35 }
  0x41   : > { %2632 = vmatmul.mubr.bf16.gmra.mrb[4].mxu0 %v635_v41 }
  0x42   : > { %2640 = vmatpush3.bf16.msra.mxu0 %v2950_v35  ;;  %2651 = vmatprep.mubr.bf16.mxu0 %v3278_v3  ;;  %v1122_v3 = vld [vmem:[%s3848_s4] sm:$0xff] }
  0x43   : > { %2641 = vmatprep.subr.bf16.mxu0 %v2951_v40  ;;  %v2820_v5 = vpack.c.bf16 %v1123_v4, %v1122_v3 }
  0x45   : > { %2821 = vmatpush3.bf16.msra.mxu1 %v2820_v5 }
  0x46   : > { %2642 = vmatpush3.bf16.msra.mxu0 %v2951_v40  ;;  %2822 = vmatprep.subr.bf16.mxu1 %v3065_v6 }
  0x47   : > { %2643 = vmatprep.subr.bf16.mxu0 %v2952_v44 }
  0x49   : > { %2824 = vmatpush3.bf16.msra.mxu1 %v2823_v9 }
  0x4a   : > { %2644 = vmatpush3.bf16.msra.mxu0 %v2952_v44  ;;  %2825 = vmatprep.subr.bf16.mxu1 %v3065_v6 }
  0x4b   : > { %2645 = vmatprep.subr.bf16.mxu0 %v2953_v45 }
  0x4d   : > { %2827 = vmatpush3.bf16.msra.mxu1 %v2826_v13 }
  0x4e   : > { %2646 = vmatpush3.bf16.msra.mxu0 %v2953_v45  ;;  %2828 = vmatprep.subr.bf16.mxu1 %v3065_v6 }
  0x4f   : > { %2647 = vmatprep.subr.bf16.mxu0 %v2955_v46 }
  0x52   : > { %2648 = vmatpush3.bf16.msra.mxu0 %v2955_v46 }
  0x53   : > { %2649 = vmatprep.subr.bf16.mxu0 %v2956_v47 }
  0x56   : > { %2650 = vmatpush3.bf16.msra.mxu0 %v2956_v47 }
  0x57   : > { %2659 = vmatprep.subr.bf16.mxu0 %v2957_v48 }
  0x59   : > { %2652 = vmatmul.mubr.bf16.vlgmr.msra.gmra.mrb[0].mxu0 %v3291_v15  ;;  %v1128_v15 = vld [vmem:[%s3848_s4 + $0x30] sm:$0xff] }
  0x5a   : > { %2660 = vmatpush3.bf16.msra.mxu0 %v2957_v48  ;;  %2655 = vmatprep.mubr.bf16.mxu0 %v3295_v20  ;;  %v2829_v17 = vpack.c.bf16 %v1129_v16, %v1128_v15 }
  0x5b   : > { %2661 = vmatprep.subr.bf16.mxu0 %v2958_v50 }
  0x5c   : > { %2830 = vmatpush3.bf16.msra.mxu1 %v2829_v17 }
  0x5d   : > { %2702 = vmatprep.subr.mxu1 %v3067_v12 }
  0x5e   : > { %2662 = vmatpush3.bf16.msra.mxu0 %v2958_v50 }
  0x5f   : > { %2663 = vmatprep.subr.bf16.mxu0 %v2959_v52 }
  0x61   : > { %2656 = vmatmul.mubr.bf16.gmra.mrb[4].mxu0 %v2963_v55 }
  0x62   : > { %2664 = vmatpush3.bf16.msra.mxu0 %v2959_v52  ;;  %2675 = vmatprep.mubr.bf16.mxu0 %v895_v57 }
  0x63   : > { %2665 = vmatprep.subr.bf16.mxu0 %v2960_v56 }
  0x66   : > { %2666 = vmatpush3.bf16.msra.mxu0 %v2960_v56 }
  0x67   : > { %2667 = vmatprep.subr.bf16.mxu0 %v2961_v58 }
  0x6a   : > { %2668 = vmatpush3.bf16.msra.mxu0 %v2961_v58 }
  0x6b   : > { %2669 = vmatprep.subr.bf16.mxu0 %v2962_v59 }
  0x6e   : > { %2670 = vmatpush3.bf16.msra.mxu0 %v2962_v59 }
  0x6f   : > { %2671 = vmatprep.subr.bf16.mxu0 %v2964_v60 }
  0x72   : > { %2672 = vmatpush3.bf16.msra.mxu0 %v2964_v60 }
  0x73   : > { %2673 = vmatprep.subr.bf16.mxu0 %v2965_v61 }
  0x76   : > { %2674 = vmatpush3.bf16.msra.mxu0 %v2965_v61 }
  0x77   : > { %2831 = vmatprep.subr.bf16.mxu0 %v3065_v6 }
  0x79   : > { %2676 = vmatmul.mubr.bf16.vlgmr.msra.gmra.mrb[0].mxu0 %v897_v1 }
  0x7a   : > { %2679 = vmatprep.mubr.bf16.mxu0 %v899_v2 }
  0x81   : > { %2680 = vmatmul.mubr.bf16.gmra.mrb[4].mxu0 %v898_v0 }
  0x82   : > { %2811 = vmatprep.mubr.msk.f32.mxu0 %vm3066_vm13, %v3067_v12 }
  0xa2   : > { %v3420_v20 = vpop.permute.xlu1 %1042 }
  0xa6   : > { %v3416_v18 = vpop.permute.xlu0 %1032  ;;  %v3430_v32 = vpop.permute.xlu1 %1047 }
  0xaa   : > { %v3418_v19 = vpop.permute.xlu0 %1037  ;;  %v3465_v60 = vpop.permute.xlu1 %1057 }
  0xae   : > { %v3428_v31 = vpop.permute.xlu0 %1052 }
  0xb2   : > { %v3455_v51 = vpop.permute.xlu0 %1062 }
 0x14c   : > { %v2677_v21 = vpop.f32.mrb[0].mxu0 }
 0x14d   : > { %v1025_v22 = vmax.f32 %v2677_v21, 0.0  ;;  %v986_v23 = vpop.f32.mrb[1].mxu0 }
 0x14e   : > { %v1023_v24 = vmax.f32 %v986_v23, 0.0  ;;  %v2678_v25 = vpop.f32.mrb[2].mxu0 }
 0x14f   : > { %v3423_v26 = vmul.f32 %v3420_v20, %v1025_v22  ;;  %v1026_v27 = vmax.f32 %v2678_v25, 0.0  ;;  %v989_v28 = vpop.f32.mrb[3].mxu0 }
 0x150   : > { %v3426_v29 = vmul.f32 %v3416_v18, %v1023_v24  ;;  %v1024_v30 = vmax.f32 %v989_v28, 0.0 }
 0x151   : > { %v3435_v34 = vmul.f32 %v3430_v32, %v1026_v27  ;;  %v1096_v36 = vmul.f32 %v3423_v26, %v3423_v26  ;;  %v1078_v41 = vsel %vm1074_vm14, %v3423_v26, 0.0 }
 0x152   : > { %v1094_v33 = vmul.f32 %v3426_v29, %v3426_v29  ;;  %v3438_v35 = vmul.f32 %v3418_v19, %v1024_v30  ;;  %v1075_v37 = vsel %vm1074_vm14, %v3426_v29, 0.0 }
 0x153   : > { %v1097_v46 = vmul.f32 %v3435_v34, %v3435_v34  ;;  %v1104_v50 = vsel %vm1074_vm14, %v1096_v36, 0.0  ;;  %v1080_v55 = vsel %vm1074_vm14, %v3435_v34, 0.0 }
 0x154   : > { %v1076_v38 = vsel %vm1074_vm14, %v3438_v35, 0.0  ;;  %v1095_v39 = vmul.f32 %v3438_v35, %v3438_v35  ;;  %v2681_v40 = vpop.f32.mrb[4].mxu0  ;;  %v1101_v45 = vsel %vm1074_vm14, %v1094_v33, 0.0 }
 0x155   : > { %v1077_v42 = vadd.f32 %v1076_v38, %v1075_v37  ;;  %v1029_v43 = vmax.f32 %v2681_v40, 0.0  ;;  %v1002_v44 = vpop.f32.mrb[5].mxu0  ;;  %v1106_v62 = vsel %vm1074_vm14, %v1097_v46, 0.0  ;;  %v2966_v46 = vld [vmem:[%s3846_s2 + $0x40] sm:$0xff]  }
 0x156   : > { %v1102_v47 = vsel %vm1074_vm14, %v1095_v39, 0.0  ;;  %v1027_v48 = vmax.f32 %v1002_v44, 0.0  ;;  %v2682_v49 = vpop.f32.mrb[6].mxu0 }
 0x157   : > { %v1079_v52 = vadd.f32 %v1078_v41, %v1077_v42  ;;  %v1103_v53 = vadd.f32 %v1102_v47, %v1101_v45  ;;  %v1005_v54 = vpop.f32.mrb[7].mxu0  ;;  %v3460_v56 = vmul.f32 %v3455_v51, %v1029_v43  ;;  %v1204_v41 = vld [vmem:[%s3849_s5] sm:$0x3]  ;;  %v2967_v47 = vld [vmem:[%s3846_s2 + $0x48] sm:$0xff]  }
 0x158   : > { %v3463_v57 = vmul.f32 %v3428_v31, %v1027_v48  ;;  %v1028_v58 = vmax.f32 %v1005_v54, 0.0  ;;  %v2968_v48 = vld [vmem:[%s3846_s2 + $0x50] sm:$0xff]  }
 0x159   : > { %v1105_v59 = vadd.f32 %v1104_v50, %v1103_v53  ;;  %v1081_v61 = vadd.f32 %v1080_v55, %v1079_v52  ;;  %v1100_v5 = vmul.f32 %v3460_v56, %v3460_v56  ;;  %v1086_v13 = vsel %vm445_vm0, %v3460_v56, 0.0 }
 0x15a   : > { %v1082_v0 = vsel %vm1074_vm14, %v3463_v57, 0.0  ;;  %v1098_v1 = vmul.f32 %v3463_v57, %v3463_v57  ;;  %v3473_v2 = vmul.f32 %v3465_v60, %v1028_v58 }
 0x15b   : > { %v1083_v3 = vadd.f32 %v1082_v0, %v1081_v61  ;;  %v1107_v4 = vadd.f32 %v1106_v62, %v1105_v59  ;;  %v1112_v21 = vsel %vm445_vm0, %v1100_v5, 0.0  ;;  %vm1205_vm0 = vcmask 15360   ;;  %v2399_v62 = vld [vmem:[%s3852_s8] ss:$0 sm:$0xff] }
 0x15c   : > { %v1108_v7 = vsel %vm1074_vm14, %v1098_v1, 0.0  ;;  %v1084_v8 = vsel %vm1074_vm14, %v3473_v2, 0.0  ;;  %v1099_v9 = vmul.f32 %v3473_v2, %v3473_v2  ;;  %v1303_v59 = vlaneseq  ;;  %v1073_v5 = vld [vmem:[%s3853_s9] sm:$0x1] }
 0x15d   : > { %v1109_v10 = vadd.f32 %v1108_v7, %v1107_v4  ;;  %v1085_v11 = vadd.f32 %v1084_v8, %v1083_v3 }
 0x15e   : > { %v1110_v15 = vsel %vm1074_vm14, %v1099_v9, 0.0  ;;  %v3503_v61 = vshrl.u32 %v1303_v59, 7  ;;  %v2971_v59 = vld [vmem:[%s3846_s2 + $0x68] sm:$0xff]  }
 0x15f   : > { %v1087_v16 = vadd.f32 %v1086_v13, %v1085_v11  ;;  %v1111_v17 = vadd.f32 %v1110_v15, %v1109_v10 }
 0x160   : > { %v1305_v1 = vsub.s32 1, %v3503_v61  ;;  %v1317_v9 = vsub.s32 0, %v3503_v61 }
 0x161   : > { %v1088_v22 = vrot.slane %v1087_v16, 4  ;;  %v1113_v23 = vadd.f32 %v1112_v21, %v1111_v17 }
 0x163   : > { %v1089_v24 = vadd.f32 %v1088_v22, %v1087_v16  ;;  %v1114_v25 = vrot.slane %v1113_v23, 4 }
 0x165   : > { %v1090_v27 = vrot.slane %v1089_v24, 2  ;;  %v1115_v28 = vadd.f32 %v1114_v25, %v1113_v23 }
 0x167   : > { %v1091_v30 = vadd.f32 %v1090_v27, %v1089_v24  ;;  %v1116_v33 = vrot.slane %v1115_v28, 2 }
 0x169   : > { %v1092_v36 = vrot.slane %v1091_v30, 1  ;;  %v1117_v37 = vadd.f32 %v1116_v33, %v1115_v28 }
 0x16b   : > { %v1118_v38 = vrot.slane %v1117_v37, 1  ;;  %v1093_v39 = vadd.f32 %v1092_v36, %v1091_v30 }
 0x16d   : > { %v1119_v40 = vadd.f32 %v1118_v38, %v1117_v37 }
 0x16f   : > { %v1121_v42 = vsel %vm1120_vm1, %v1093_v39, %v1119_v40 }
 0x170   : > { %2700 = vmatmul.mubr.msk.f32.vlgmr.msra.gmra.mrb[0].mxu1 %vm1074_vm14, %v1121_v42  ;;  %v2970_v42 = vld [vmem:[%s3846_s2 + $0x60] sm:$0xff]  }
 0x171   : > { %2703 = vmatpush3.msk.msra.mxu1 %vm1209_vm3, %v1204_v41  ;;  %2704 = vmatprep.mubr.msk.f32.mxu1 %vm3066_vm13, %v3067_v12 }
 0x172   : > { %2707 = vmatprep.subr.bf16.mxu1 %v2966_v46 }
 0x243   : > { %v1199_v43 = vpop.f32.mrb[0].mxu1 }
 0x244   : > { %v1203_v44 = vmul.f32 0.0006510417, %v1199_v43  ;;  %v2701_v45 = vpop.f32.mrb[1].mxu1 }
 0x246   : > { %2705 = vmatmul.mubr.msk.f32.vlgmr.msra.gmra.mrb[2].mxu1 %vm1205_vm0, %v1203_v44 }
 0x247   : > { %2708 = vmatpush3.bf16.msra.mxu1 %v2966_v46 }
 0x248   : > { %2709 = vmatprep.subr.bf16.mxu1 %v2967_v47 }
 0x24b   : > { %2710 = vmatpush3.bf16.msra.mxu1 %v2967_v47 }
 0x24c   : > { %2711 = vmatprep.subr.bf16.mxu1 %v2968_v48 }
 0x24f   : > { %2712 = vmatpush3.bf16.msra.mxu1 %v2968_v48 }
 0x319   : > { %v1279_v49 = vpop.f32.mrb[2].mxu1 }
 0x31a   : > { %v1283_v50 = vmul.f32 %v1279_v49, %v1279_v49  ;;  %v2706_v52 = vpop.f32.mrb[3].mxu1 }
 0x31c   : > { %v1285_v53 = vrot.slane %v1283_v50, 7 }
 0x31e   : > { %v1287_v54 = vsub.f32 %v1279_v49, %v1285_v53 }
 0x320   : > { %v1288_v55 = vmax.f32 %v1287_v54, 0.0 }
 0x322   : > { %v1289_v58 = vadd.f32 1e-05, %v1288_v55 }
 0x324   : > { %2996 = vrsqrt.f32 %v1289_v58 }
 0x32e   : > { %v2997_v0 = vpop.eup %2996 }
 0x32f   : > { %v1297_v3 = vmul.f32 %v2997_v0, %v2399_v62 }
 0x331   : > { %v1299_v4 = vrot.slane %v1297_v3, 1  ;;  %v1306_v7 = vrot.slane %v1297_v3, %v1305_v1 }
 0x333   : > { %v1301_v8 = vmul.f32 %v1299_v4, %v1279_v49  ;;  %v1307_v11 = vmul.f32 %v1306_v7, %v3426_v29  ;;  %v1308_v15 = vmul.f32 %v1306_v7, %v3438_v35  ;;  %v1309_v16 = vmul.f32 %v1306_v7, %v3423_v26  ;;  %v2969_v29 = vld [vmem:[%s3846_s2 + $0x58] sm:$0xff]  }
 0x334   : > { %v1310_v17 = vmul.f32 %v1306_v7, %v3435_v34  ;;  %v1311_v21 = vmul.f32 %v1306_v7, %v3463_v57  ;;  %v1312_v22 = vmul.f32 %v1306_v7, %v3473_v2  ;;  %v1313_v23 = vmul.f32 %v1306_v7, %v3460_v56  ;;  %2713 = vmatprep.subr.bf16.mxu1 %v2969_v29 }
 0x335   : > { %v1302_v10 = vsub.f32 %v1073_v5, %v1301_v8  ;;  %2714 = vmatpush3.bf16.msra.mxu1 %v2969_v29 }
 0x336   : > { %2715 = vmatprep.subr.bf16.mxu1 %v2970_v42 }
 0x337   : > { %v1318_v13 = vrot.slane %v1302_v10, %v1317_v9 }
 0x339   : > { %v1320_v24 = vadd.f32 %v1318_v13, %v1307_v11  ;;  %v1321_v25 = vadd.f32 %v1318_v13, %v1308_v15  ;;  %v1322_v27 = vadd.f32 %v1318_v13, %v1309_v16  ;;  %v1323_v28 = vadd.f32 %v1318_v13, %v1310_v17  ;;  %2716 = vmatpush3.bf16.msra.mxu1 %v2970_v42 }
 0x33a   : > { %v1324_v30 = vadd.f32 %v1318_v13, %v1311_v21  ;;  %v1325_v35 = vadd.f32 %v1318_v13, %v1312_v22  ;;  %v1326_v33 = vadd.f32 %v1318_v13, %v1313_v23  ;;  %2717 = vmatprep.subr.bf16.mxu1 %v2971_v59  ;;  %v2972_v23 = vld [vmem:[%s3846_s2 + $0x70] sm:$0xff]  }
 0x33b   : > { %v1327_v26 = vmul.f32 %v1320_v24, %v3416_v18  ;;  %v1328_v34 = vmul.f32 %v1321_v25, %v3418_v19  ;;  %v1329_v57 = vmul.f32 %v1322_v27, %v3420_v20  ;;  %v1330_v2 = vmul.f32 %v1323_v28, %v3430_v32  ;;  %v2973_v24 = vld [vmem:[%s3846_s2 + $0x78] sm:$0xff]  }
 0x33c   : > { %v1331_v56 = vmul.f32 %v1324_v30, %v3428_v31  ;;  %v1332_v36 = vmul.f32 %v1325_v35, %v3465_v60  ;;  %v1333_v37 = vmul.f32 %v1326_v33, %v3455_v51 }
 0x33d   : > { %v2489_v38 = vpack.c.bf16 %v1327_v26, %v1327_v26  ;;  %v2490_v39 = vpack.c.bf16 %v1328_v34, %v1328_v34  ;;  %v2491_v40 = vpack.c.bf16 %v1329_v57, %v1329_v57  ;;  %v2492_v41 = vpack.c.bf16 %v1330_v2, %v1330_v2  ;;  %2718 = vmatpush3.bf16.msra.mxu1 %v2971_v59  ;;  %v2976_v2 = vld [vmem:[%s3846_s2] sm:$0xff]  }
 0x33e   : > { %v2493_v43 = vpack.c.bf16 %v1331_v56, %v1331_v56  ;;  %v2494_v44 = vpack.c.bf16 %v1332_v36, %v1332_v36  ;;  %v2495_v47 = vpack.c.bf16 %v1333_v37, %v1333_v37  ;;  %2719 = vmatprep.subr.bf16.mxu1 %v2972_v23 }
 0x33f   : > { %v1357_v45 = vshrl.u32 %v2489_v38, 16  ;;  %v1365_v46 = vshrl.u32 %v2490_v39, 16  ;;  %v1360_v48 = vshll.u32 %v2489_v38, 16  ;;  %v1368_v49 = vshll.u32 %v2490_v39, 16 }
 0x340   : > { %v1374_v50 = vshrl.u32 %v2491_v40, 16  ;;  %v1383_v52 = vshrl.u32 %v2492_v41, 16  ;;  %v1377_v55 = vshll.u32 %v2491_v40, 16  ;;  %v1392_v58 = vshrl.u32 %v2493_v43, 16 }
 0x341   : > { %v1359_v53 = vrot.slane %v1357_v45, 7  ;;  %v1367_v54 = vrot.slane %v1365_v46, 7  ;;  %v1386_v3 = vshll.u32 %v2492_v41, 16  ;;  %v1401_v4 = vshrl.u32 %v2494_v44, 16  ;;  %2720 = vmatpush3.bf16.msra.mxu1 %v2972_v23 }
 0x342   : > { %v1376_v62 = vrot.slane %v1374_v50, 7  ;;  %v1385_v0 = vrot.slane %v1383_v52, 7  ;;  %v1394_v17 = vrot.slane %v1392_v58, 7  ;;  %v1410_v22 = vshrl.u32 %v2495_v47, 16  ;;  %2721 = vmatprep.subr.bf16.mxu1 %v2973_v24 }
 0x343   : > { %v1362_v5 = vor.u32 %v1360_v48, %v1359_v53  ;;  %v1363_v7 = vrot.slane %v1359_v53, 4  ;;  %v1370_v8 = vor.u32 %v1368_v49, %v1367_v54  ;;  %v1372_v10 = vrot.slane %v1367_v54, 4 }
 0x344   : > { %v1379_v11 = vor.u32 %v1377_v55, %v1376_v62  ;;  %v1381_v13 = vrot.slane %v1376_v62, 4  ;;  %v1388_v15 = vor.u32 %v1386_v3, %v1385_v0  ;;  %v1403_v21 = vrot.slane %v1401_v4, 7 }
 0x345   : > { %1417 = vrot.lane.b32.xlu1 %v1362_v5, %s3857_s17  ;;  %v1371_v16 = vsel %vm3212_vm8, %v1363_v7, %v1370_v8  ;;  %v1395_v25 = vshll.u32 %v2493_v43, 16  ;;  %v1404_v27 = vshll.u32 %v2494_v44, 16  ;;  %v1390_v29 = vrot.slane %v1385_v0, 4  ;;  %2722 = vmatpush3.bf16.msra.mxu1 %v2973_v24  ;;  %v2980_v24 = vld [vmem:[%s3846_s2 + $0x10] sm:$0xff]  }
 0x346   : > { %1419 = vrot.lane.b32.xlu0 %v1371_v16, %s3857_s17  ;;  %v1380_v28 = vsel %vm3212_vm8, %v1372_v10, %v1379_v11  ;;  %v1412_v35 = vrot.slane %v1410_v22, 7  ;;  %v1389_v33 = vsel %vm3212_vm8, %v1381_v13, %v1388_v15  ;;  %v1399_v26 = vrot.slane %v1394_v17, 4  ;;  %2731 = vmatprep.subr.bf16.mxu1 %v2976_v2  ;;  %v2978_v11 = vld [vmem:[%s3846_s2 + $0x8] sm:$0xff]  }
 0x347   : > { %v1397_v30 = vor.u32 %v1395_v25, %v1394_v17  ;;  %v1406_v34 = vor.u32 %v1404_v27, %v1403_v21  ;;  %v1413_v57 = vshll.u32 %v2495_v47, 16  ;;  %v1408_v36 = vrot.slane %v1403_v21, 4 }
 0x349   : > { %1421 = vrot.lane.b32.xlu1 %v1380_v28, %s3857_s17  ;;  %v1398_v56 = vsel %vm3212_vm8, %v1390_v29, %v1397_v30  ;;  %v1415_v37 = vor.u32 %v1413_v57, %v1412_v35  ;;  %v1407_v38 = vsel %vm3212_vm8, %v1399_v26, %v1406_v34  ;;  %v2981_v30 = vld [vmem:[%s3846_s2 + $0x18] sm:$0xff]   ;;  %v2982_v35 = vld [vmem:[%s3846_s2 + $0x20] sm:$0xff]   ;;  %v2984_v26 = vld [vmem:[%s3846_s2 + $0x30] sm:$0xff]  }
 0x34a   : > { %1423 = vrot.lane.b32.xlu0 %v1389_v33, %s3857_s17  ;;  %v2983_v33 = vld [vmem:[%s3846_s2 + $0x28] sm:$0xff]   ;;  %v2985_v34 = vld [vmem:[%s3846_s2 + $0x38] sm:$0xff]   ;;  %v2986_v57 = vld [vmem:[%s3846_s2 + $0x80] sm:$0xff]  }
 0x34b   : > { %v1416_v39 = vsel %vm3212_vm8, %v1408_v36, %v1415_v37  ;;  %vm1448_vm8 = vcmask 1042944   ;;  %v2989_v36 = vld [vmem:[%s3846_s2 + $0x90] sm:$0xff]  }
 0x34c   : > { %vm1449_vm5 = vmand %vm1448_vm8, %vm501_vm15  ;;  %vm1950_vm15 = vcmask 1043456  }
 0x34d   : > { %1425 = vrot.lane.b32.xlu1 %v1398_v56, %s3857_s17 }
 0x34e   : > { %1427 = vrot.lane.b32.xlu0 %v1407_v38, %s3857_s17 }
 0x351   : > { %1429 = vrot.lane.b32.xlu1 %v1416_v39, %s3857_s17  ;;  %s3000_s17 = scalar_lea.vmem %s3793_s26, 384 }
 0x352   : > { %p3001_p11 = scmp.ne.s32.totalorder %s3793_s26, %s3000_s17  ;;  %p3008_p1 = scmp.lt.s32.totalorder %s3006_s28, %s3000_s17 }
 0x354   : > { %p3002_p12 = pnand %p3001_p11, %p3174_p5  ;;  %p3009_p2 = por %p3008_p1, %p3007_p0 }
 0x356   : > { %p3003_p13 = pneg %p3002_p12 }
 0x358   : > { %p3010_p3 = pnand %p3009_p2, %p3003_p13 }
 0x3b7   : > { %v1418_v40 = vpop.permute.xlu1 %1417 }
 0x3b8   : > { %v1440_v41 = vsel %vm1439_vm4, %v1418_v40, %v3272_v63  ;;  %v1420_v42 = vpop.permute.xlu0 %1419  ;;  %v1450_v63 = vld [vmem:[#allocation2 + $0x18] sm:$0x7] }
 0x3b9   : > { %1441 = vst [vmem:[#allocation2] sm:$0xf] %v1440_v41  ;;  %1443 = vst.msk [vmem:[#allocation2 + $0x4] sm:$0xf] %vm1438_vm2, %v1420_v42  ;;  %v2991_v41 = vld [vmem:[%s3846_s2 + $0x98] sm:$0xff]  }
 0x3bb   : > { %v1422_v43 = vpop.permute.xlu1 %1421 }
 0x3bc   : > { %1444 = vst.msk [vmem:[#allocation2 + $0x8] sm:$0xf] %vm1438_vm2, %v1422_v43  ;;  %v1424_v44 = vpop.permute.xlu0 %1423  ;;  %v2992_v43 = vld [vmem:[%s3846_s2 + $0xa0] sm:$0xff]  }
 0x3bd   : > { %1445 = vst.msk [vmem:[#allocation2 + $0xc] sm:$0xf] %vm1438_vm2, %v1424_v44  ;;  %v2993_v44 = vld [vmem:[%s3846_s2 + $0xa8] sm:$0xff]  }
 0x3bf   : > { %v1426_v14 = vpop.permute.xlu1 %1425 }
 0x3c0   : > { %1446 = vst.msk [vmem:[#allocation2 + $0x10] sm:$0xf] %vm1438_vm2, %v1426_v14  ;;  %v1428_v45 = vpop.permute.xlu0 %1427  ;;  %v1453_v46 = vld [vmem:[#allocation2] sm:$0xf]  ;;  %v3575_v47 = vld [vmem:[#allocation2 + $0x4] sm:$0xf] }
 0x3c1   : > { %1447 = vst.msk [vmem:[#allocation2 + $0x14] sm:$0xf] %vm1438_vm2, %v1428_v45  ;;  %v2423_v48 = vcombine.low %v1453_v46, %v3575_v47  ;;  %v1778_v56 = vld [vmem:[#allocation2] sm:$0xe]  ;;  %v2994_v14 = vld [vmem:[%s3846_s2 + $0xb0] sm:$0xff]   ;;  %v2995_v45 = vld [vmem:[%s3846_s2 + $0xb8] sm:$0xff]  }
 0x3c2   : > { %v2460_v37 = vcombine.low %v1778_v56, %v3575_v47  ;;  %v1980_v47 = vld [vmem:[%s3850_s6] sm:$0xff] }
 0x3c3   : > { %v1430_v49 = vpop.permute.xlu1 %1429  ;;  %v1515_v50 = vshll.u32 %v2423_v48, 16  ;;  %v1513_v54 = vshrl.u32 %v2423_v48, 16 }
 0x3c4   : > { %v1451_v52 = vsel %vm1449_vm5, %v1430_v49, %v1450_v63  ;;  %v3580_v53 = vld [vmem:[#allocation2 + $0x8] sm:$0xff]   ;;  %v1799_v40 = vrot.slane %v2460_v37, 1  ;;  %v1982_v49 = vld [vmem:[%s3850_s6 + $0x10] sm:$0xff] }
 0x3c5   : > { %1452 = vst [vmem:[#allocation2 + $0x18] sm:$0x7] %v1451_v52  ;;  %v1517_v55 = vrot.slane %v1515_v50, 1  ;;  %v1520_v58 = vshll.u32 %v3580_v53, 16  ;;  %v1524_v4 = vshrl.u32 %v3580_v53, 16  ;;  %v1800_v38 = vrot.slane %v3580_v53, 1 }
 0x3c6   : > { %v1981_v63 = vld [vmem:[%s3850_s6 + $0x8] sm:$0xff]  ;;  %v1983_v50 = vld [vmem:[%s3850_s6 + $0x18] sm:$0xff] }
 0x3c7   : > { %v1518_v59 = vor.u32 %v1517_v55, %v1513_v54  ;;  %v1522_v62 = vrot.slane %v1520_v58, 1  ;;  %v1801_v42 = vsel %vm892_vm12, %v1799_v40, %v1800_v38  ;;  %v2835_v52 = vpack.c.bf16 %v1983_v50, %v1982_v49  ;;  %v1985_v54 = vld [vmem:[%s3850_s6 + $0x28] sm:$0xff]  ;;  %v1986_v58 = vld [vmem:[%s3850_s6 + $0x30] sm:$0xff] }
 0x3c8   : > { %v3583_v0 = vld [vmem:[#allocation2 + $0x10] sm:$0xff]  }
 0x3c9   : > { %v1523_v3 = vsel %vm604_vm11, %v1518_v59, %v1522_v62  ;;  %v1528_v5 = vshll.u32 %v3583_v0, 16  ;;  %v1526_v7 = vor.u32 %v1524_v4, %v1522_v62  ;;  %v1532_v15 = vshrl.u32 %v3583_v0, 16  ;;  %v1987_v59 = vld [vmem:[%s3850_s6 + $0x38] sm:$0xff] }
 0x3ca   : > { %2723 = vmatprep.mubr.bf16.mxu1 %v1523_v3  ;;  %v1802_v17 = vrot.slane %v3583_v0, 1  ;;  %v2841_v62 = vpack.c.bf16 %v1987_v59, %v1986_v58  ;;  %v1989_v3 = vld [vmem:[%s3850_s6 + $0x48] sm:$0xff] }
 0x3cb   : > { %v1530_v8 = vrot.slane %v1528_v5, 1  ;;  %v1990_v5 = vld [vmem:[%s3850_s6 + $0x50] sm:$0xff] }
 0x3cc   : > { %v3588_v10 = vld [vmem:[#allocation2 + $0x18] ss:$0 sps:$4 sm:$0x77]   ;;  %v1803_v46 = vsel %vm892_vm12, %v1800_v38, %v1802_v17 }
 0x3cd   : > { %v1531_v13 = vsel %vm604_vm11, %v1526_v7, %v1530_v8  ;;  %v1536_v16 = vshll.u32 %v3588_v10, 16  ;;  %v1804_v21 = vrot.slane %v3588_v10, 1  ;;  %v1534_v22 = vor.u32 %v1532_v15, %v1530_v8  ;;  %v2988_v39 = vld [vmem:[#allocation2 + $0x18] ss:$0 sps:$4 sm:$0x33]   ;;  %v1994_v15 = vld [vmem:[%s3850_s6 + $0x70] sm:$0xff] }
 0x3ce   : > { %2724 = vmatmul.mubr.bf16.vlgmr.msra.gmra.mrb[4].mxu1 %v1531_v13  ;;  %v1540_v28 = vshrl.u32 %v3588_v10, 16  ;;  %v1991_v7 = vld [vmem:[%s3850_s6 + $0x58] sm:$0xff]  ;;  %v1992_v10 = vld [vmem:[%s3850_s6 + $0x60] sm:$0xff] }
 0x3cf   : > { %2732 = vmatpush3.bf16.msra.mxu1 %v2976_v2  ;;  %v1538_v23 = vrot.slane %v1536_v16, 1  ;;  %v1805_v25 = vsel %vm892_vm12, %v1802_v17, %v1804_v21  ;;  %v2987_v2 = vld [vmem:[%s3846_s2 + $0x88] sm:$0xff]   ;;  %v2847_v8 = vpack.c.bf16 %v1991_v7, %v1990_v5  ;;  %v1995_v16 = vld [vmem:[%s3850_s6 + $0x78] sm:$0xff]  ;;  %vm3779_vm12 = vmor %vm2209_vm9, %vm2210_vm10 }
 0x3d0   : > { %2733 = vmatprep.subr.bf16.mxu1 %v2978_v11  ;;  %v2853_v17 = vpack.c.bf16 %v1995_v16, %v1994_v15 }
 0x3d1   : > { %v1539_v27 = vsel %vm604_vm11, %v1534_v22, %v1538_v23  ;;  %v1542_v29 = vor.u32 %v1540_v28, %v1538_v23  ;;  %vm3774_vm11 = vmor %vm1209_vm3, %vm2235_vm7 }
 0x3d2   : > { %2727 = vmatprep.mubr.bf16.mxu1 %v1539_v27 }
 0x3d3   : > { %2734 = vmatpush3.bf16.msra.mxu1 %v2978_v11  ;;  %v1993_v11 = vld [vmem:[%s3850_s6 + $0x68] sm:$0xff] }
 0x3d4   : > { %2735 = vmatprep.subr.bf16.mxu1 %v2980_v24  ;;  %v2850_v13 = vpack.c.bf16 %v1993_v11, %v1992_v10  ;;  %v2067_v11 = vld [vmem:[%s3851_s7] sm:$0xf] }
 0x3d6   : > { %2728 = vmatmul.mubr.bf16.gmra.mrb[8].mxu1 %v1542_v29 }
 0x3d7   : > { %2736 = vmatpush3.bf16.msra.mxu1 %v2980_v24  ;;  %2747 = vmatprep.mubr.bf16.mxu1 %v2423_v48  ;;  %v2832_v48 = vpack.c.bf16 %v1981_v63, %v1980_v47 }
 0x3d8   : > { %2737 = vmatprep.subr.bf16.mxu1 %v2981_v30 }
 0x3d9   : > { %2833 = vmatpush3.bf16.msra.mxu0 %v2832_v48 }
 0x3da   : > { %2834 = vmatprep.subr.bf16.mxu0 %v3065_v6 }
 0x3db   : > { %2738 = vmatpush3.bf16.msra.mxu1 %v2981_v30 }
 0x3dc   : > { %2739 = vmatprep.subr.bf16.mxu1 %v2982_v35 }
 0x3dd   : > { %2836 = vmatpush3.bf16.msra.mxu0 %v2835_v52 }
 0x3de   : > { %2837 = vmatprep.subr.bf16.mxu0 %v3065_v6 }
 0x3df   : > { %2740 = vmatpush3.bf16.msra.mxu1 %v2982_v35 }
 0x3e0   : > { %2741 = vmatprep.subr.bf16.mxu1 %v2983_v33 }
 0x3e3   : > { %2742 = vmatpush3.bf16.msra.mxu1 %v2983_v33 }
 0x3e4   : > { %2743 = vmatprep.subr.bf16.mxu1 %v2984_v26 }
 0x3e7   : > { %2744 = vmatpush3.bf16.msra.mxu1 %v2984_v26 }
 0x3e8   : > { %2745 = vmatprep.subr.bf16.mxu1 %v2985_v34 }
 0x3eb   : > { %2746 = vmatpush3.bf16.msra.mxu1 %v2985_v34 }
 0x3ec   : > { %2755 = vmatprep.subr.bf16.mxu1 %v2986_v57 }
 0x3ee   : > { %2748 = vmatmul.mubr.bf16.vlgmr.msra.gmra.mrb[4].mxu1 %v3580_v53  ;;  %v1984_v53 = vld [vmem:[%s3850_s6 + $0x20] sm:$0xff] }
 0x3ef   : > { %2751 = vmatprep.mubr.bf16.mxu1 %v3583_v0  ;;  %2756 = vmatpush3.bf16.msra.mxu1 %v2986_v57  ;;  %v2838_v55 = vpack.c.bf16 %v1985_v54, %v1984_v53  ;;  %v1988_v0 = vld [vmem:[%s3850_s6 + $0x40] sm:$0xff] }
 0x3f0   : > { %2757 = vmatprep.subr.bf16.mxu1 %v2987_v2  ;;  %v2844_v4 = vpack.c.bf16 %v1989_v3, %v1988_v0 }
 0x3f1   : > { %2839 = vmatpush3.bf16.msra.mxu0 %v2838_v55 }
 0x3f2   : > { %2840 = vmatprep.subr.bf16.mxu0 %v3065_v6 }
 0x3f3   : > { %2758 = vmatpush3.bf16.msra.mxu1 %v2987_v2 }
 0x3f4   : > { %2759 = vmatprep.subr.bf16.mxu1 %v2989_v36 }
 0x3f5   : > { %2842 = vmatpush3.bf16.msra.mxu0 %v2841_v62 }
 0x3f6   : > { %2752 = vmatmul.mubr.bf16.gmra.mrb[8].mxu1 %v2988_v39  ;;  %2843 = vmatprep.subr.bf16.mxu0 %v3065_v6 }
 0x3f7   : > { %2760 = vmatpush3.bf16.msra.mxu1 %v2989_v36  ;;  %2771 = vmatprep.mubr.bf16.mxu1 %v1801_v42 }
 0x3f8   : > { %2761 = vmatprep.subr.bf16.mxu1 %v2991_v41 }
 0x3f9   : > { %2845 = vmatpush3.bf16.msra.mxu0 %v2844_v4 }
 0x3fa   : > { %2846 = vmatprep.subr.bf16.mxu0 %v3065_v6 }
 0x3fb   : > { %2762 = vmatpush3.bf16.msra.mxu1 %v2991_v41 }
 0x3fc   : > { %2763 = vmatprep.subr.bf16.mxu1 %v2992_v43 }
 0x3fd   : > { %2848 = vmatpush3.bf16.msra.mxu0 %v2847_v8 }
 0x3fe   : > { %2849 = vmatprep.subr.bf16.mxu0 %v3065_v6 }
 0x3ff   : > { %2764 = vmatpush3.bf16.msra.mxu1 %v2992_v43 }
 0x400   : > { %2765 = vmatprep.subr.bf16.mxu1 %v2993_v44 }
 0x401   : > { %2851 = vmatpush3.bf16.msra.mxu0 %v2850_v13 }
 0x402   : > { %2852 = vmatprep.subr.bf16.mxu0 %v3065_v6 }
 0x403   : > { %2766 = vmatpush3.bf16.msra.mxu1 %v2993_v44 }
 0x404   : > { %2767 = vmatprep.subr.bf16.mxu1 %v2994_v14 }
 0x405   : > { %2854 = vmatpush3.bf16.msra.mxu0 %v2853_v17 }
 0x406   : > { %2814 = vmatprep.subr.mxu0 %v3067_v12 }
 0x407   : > { %2768 = vmatpush3.bf16.msra.mxu1 %v2994_v14 }
 0x408   : > { %2769 = vmatprep.subr.bf16.mxu1 %v2995_v45 }
 0x40b   : > { %2770 = vmatpush3.bf16.msra.mxu1 %v2995_v45 }
 0x40e   : > { %2772 = vmatmul.mubr.bf16.vlgmr.msra.gmra.mrb[4].mxu1 %v1803_v46 }
 0x40f   : > { %2775 = vmatprep.mubr.bf16.mxu1 %v1805_v25 }
 0x416   : > { %2776 = vmatmul.mubr.bf16.gmra.mrb[8].mxu1 %v1804_v21 }
 0x4e1   : > { %v2773_v21 = vpop.f32.mrb[4].mxu1 }
 0x4e2   : > { %v1892_v22 = vpop.f32.mrb[5].mxu1  ;;  %v1931_v23 = vmax.f32 %v2773_v21, 0.0 }
 0x4e3   : > { %v1929_v24 = vmax.f32 %v1892_v22, 0.0  ;;  %v2774_v25 = vpop.f32.mrb[6].mxu1 }
 0x4e4   : > { %v1932_v27 = vmax.f32 %v2774_v25, 0.0  ;;  %v1895_v28 = vpop.f32.mrb[7].mxu1  ;;  %v3717_v35 = vmul.f32 %v1931_v23, %v3420_v20 }
 0x4e5   : > { %v3714_v29 = vmul.f32 %v1929_v24, %v3416_v18  ;;  %v1930_v30 = vmax.f32 %v1895_v28, 0.0 }
 0x4e6   : > { %v3723_v6 = vmul.f32 %v1932_v27, %v3430_v32  ;;  %v1961_v20 = vmul.f32 %v3717_v35, %v3717_v35 }
 0x4e7   : > { %v3720_v33 = vmul.f32 %v1930_v30, %v3418_v19  ;;  %v1959_v26 = vmul.f32 %v3714_v29, %v3714_v29  ;;  %v2471_v30 = vld [vmem:[%s3854_s10] ss:$0 sm:$0xff] }
 0x4e8   : > { %v1962_v38 = vmul.f32 %v3723_v6, %v3723_v6 }
 0x4e9   : > { %v1945_v34 = vadd.f32 %v3720_v33, %v3714_v29  ;;  %v1960_v18 = vmul.f32 %v3720_v33, %v3720_v33  ;;  %v2777_v57 = vpop.f32.mrb[8].mxu1 }
 0x4ea   : > { %v1935_v2 = vmax.f32 %v2777_v57, 0.0  ;;  %v1908_v56 = vpop.f32.mrb[9].mxu1 }
 0x4eb   : > { %v1946_v19 = vadd.f32 %v1945_v34, %v3717_v35  ;;  %v1966_v36 = vadd.f32 %v1960_v18, %v1959_v26  ;;  %v1933_v32 = vmax.f32 %v1908_v56, 0.0  ;;  %v2778_v37 = vpop.f32.mrb[10].mxu1  ;;  %v1944_v18 = vld [vmem:[%s3855_s11] sm:$0x1] }
 0x4ec   : > { %v3737_v39 = vmul.f32 %v1935_v2, %v3455_v51  ;;  %v1911_v40 = vpop.f32.mrb[11].mxu1 }
 0x4ed   : > { %v1967_v41 = vadd.f32 %v1966_v36, %v1961_v20  ;;  %v1940_v42 = vmul.f32 %v1933_v32, %v3428_v31  ;;  %v1947_v43 = vadd.f32 %v1946_v19, %v3723_v6  ;;  %v1934_v44 = vmax.f32 %v1911_v40, 0.0 }
 0x4ee   : > { %v1965_v63 = vmul.f32 %v3737_v39, %v3737_v39  ;;  %v1951_v50 = vsel %vm1950_vm15, %v3737_v39, 0.0 }
 0x4ef   : > { %v1948_v14 = vadd.f32 %v1947_v43, %v1940_v42  ;;  %v1963_v45 = vmul.f32 %v1940_v42, %v1940_v42  ;;  %v1968_v46 = vadd.f32 %v1967_v41, %v1962_v38  ;;  %v1941_v47 = vmul.f32 %v1934_v44, %v3465_v60 }
 0x4f0   : > { %v1971_v53 = vsel %vm1950_vm15, %v1965_v63, 0.0 }
 0x4f1   : > { %v1969_v48 = vadd.f32 %v1968_v46, %v1963_v45  ;;  %v1949_v49 = vadd.f32 %v1948_v14, %v1941_v47  ;;  %v1964_v51 = vmul.f32 %v1941_v47, %v1941_v47 }
 0x4f3   : > { %v1952_v52 = vadd.f32 %v1951_v50, %v1949_v49  ;;  %v1970_v31 = vadd.f32 %v1969_v48, %v1964_v51 }
 0x4f5   : > { %v1953_v54 = vrot.slane %v1952_v52, 4  ;;  %v1972_v55 = vadd.f32 %v1971_v53, %v1970_v31 }
 0x4f7   : > { %v1954_v58 = vadd.f32 %v1953_v54, %v1952_v52  ;;  %v1973_v59 = vrot.slane %v1972_v55, 4 }
 0x4f9   : > { %v1955_v62 = vrot.slane %v1954_v58, 2  ;;  %v1974_v0 = vadd.f32 %v1973_v59, %v1972_v55 }
 0x4fb   : > { %v1956_v60 = vadd.f32 %v1955_v62, %v1954_v58  ;;  %v1975_v3 = vrot.slane %v1974_v0, 2 }
 0x4fd   : > { %v1957_v4 = vrot.slane %v1956_v60, 1  ;;  %v1976_v5 = vadd.f32 %v1975_v3, %v1974_v0 }
 0x4ff   : > { %v1977_v7 = vrot.slane %v1976_v5, 1  ;;  %v1958_v8 = vadd.f32 %v1957_v4, %v1956_v60 }
 0x501   : > { %v1978_v10 = vadd.f32 %v1977_v7, %v1976_v5 }
 0x503   : > { %v1979_v13 = vsel %vm1120_vm1, %v1958_v8, %v1978_v10 }
 0x504   : > { %2812 = vmatmul.mubr.f32.vlgmr.msra.gmra.mrb[8].mxu0 %v1979_v13 }
 0x505   : > { %2815 = vmatpush3.msk.msra.mxu0 %vm1950_vm15, %v2067_v11  ;;  %2816 = vmatprep.mubr.msk.f32.mxu0 %vm3066_vm13, %v3067_v12 }
 0x5d7   : > { %v2062_v15 = vpop.f32.mrb[8].mxu0 }
 0x5d8   : > { %v2066_v16 = vmul.f32 0.0006510417, %v2062_v15  ;;  %v2813_v17 = vpop.f32.mrb[9].mxu0 }
 0x5da   : > { %2817 = vmatmul.mubr.msk.f32.vlgmr.msra.gmra.mrb[10].mxu0 %vm2068_vm6, %v2066_v16 }
 0x6ad   : > { %v2141_v21 = vpop.f32.mrb[10].mxu0 }
 0x6ae   : > { %v2145_v22 = vmul.f32 %v2141_v21, %v2141_v21  ;;  %v2818_v23 = vpop.f32.mrb[11].mxu0 }
 0x6b0   : > { %v2147_v24 = vrot.slane %v2145_v22, 7 }
 0x6b2   : > { %v2149_v25 = vsub.f32 %v2141_v21, %v2147_v24 }
 0x6b4   : > { %v2150_v27 = vmax.f32 %v2149_v25, 0.0 }
 0x6b6   : > { %v2151_v28 = vadd.f32 1e-05, %v2150_v27 }
 0x6b8   : > { %2998 = vrsqrt.f32 %v2151_v28 }
 0x6c2   : > { %v2999_v12 = vpop.eup %2998 }
 0x6c3   : > { %v2159_v26 = vmul.f32 %v2999_v12, %v2471_v30 }
 0x6c5   : > { %v2161_v34 = vrot.slane %v2159_v26, 1  ;;  %v2168_v57 = vrot.slane %v2159_v26, %v1305_v1 }
 0x6c7   : > { %v2163_v2 = vmul.f32 %v2161_v34, %v2141_v21  ;;  %v2173_v20 = vmul.f32 %v2168_v57, %v1940_v42  ;;  %v2169_v36 = vmul.f32 %v2168_v57, %v3714_v29  ;;  %v2170_v32 = vmul.f32 %v2168_v57, %v3720_v33 }
 0x6c8   : > { %v2171_v37 = vmul.f32 %v2168_v57, %v3717_v35  ;;  %v2172_v38 = vmul.f32 %v2168_v57, %v3723_v6  ;;  %v2174_v40 = vmul.f32 %v2168_v57, %v1941_v47  ;;  %v2175_v1 = vmul.f32 %v2168_v57, %v3737_v39 }
 0x6c9   : > { %v2164_v56 = vsub.f32 %v1944_v18, %v2163_v2 }
 0x6cb   : > { %v2180_v19 = vrot.slane %v2164_v56, %v1317_v9 }
 0x6cd   : > { %v2186_v41 = vadd.f32 %v2180_v19, %v2173_v20  ;;  %v2182_v43 = vadd.f32 %v2180_v19, %v2169_v36  ;;  %v2183_v42 = vadd.f32 %v2180_v19, %v2170_v32  ;;  %v2184_v44 = vadd.f32 %v2180_v19, %v2171_v37 }
 0x6ce   : > { %v2185_v14 = vadd.f32 %v2180_v19, %v2172_v38  ;;  %v2187_v61 = vadd.f32 %v2180_v19, %v2174_v40  ;;  %v2188_v9 = vadd.f32 %v2180_v19, %v2175_v1 }
 0x6cf   : > { %v2507_v29 = vpack.c.bf16 %v2183_v42, %v2182_v43  ;;  %v2498_v45 = vpack.c.bf16 %v2184_v44, %v2184_v44  ;;  %v2500_v33 = vpack.c.bf16 %v2186_v41, %v2186_v41 }
 0x6d0   : > { %v2499_v6 = vpack.c.bf16 %v2185_v14, %v2185_v14  ;;  %v2502_v39 = vpack.c.bf16 %v2187_v61, %v2187_v61  ;;  %v2503_v46 = vpack.c.bf16 %v2188_v9, %v2188_v9 }
 0x6d1   : > { %2508 = vst [vmem:[%s406_s19] sm:$0xff] %v2507_v29   ;;  %v2477_v63 = vrot.slane %v2498_v45, 9  ;;  %v2483_v48 = vrot.slane %v2500_v33, 10  ;;  %v2217_v50 = vrot.slane %v2500_v33, 5 }
 0x6d2   : > { %v2214_v49 = vrot.slane %v2499_v6, 5  ;;  %v2239_v51 = vrot.slane %v2502_v39, 6  ;;  %v2242_v52 = vrot.slane %v2503_v46, 6 }
 0x6d4   : > { %v2215_v31 = vsel %vm3779_vm12, %v2477_v63, %v2214_v49  ;;  %v2216_v53 = vrot.slane %v2214_v49, 4  ;;  %v2240_v54 = vsel %vm3774_vm11, %v2483_v48, %v2239_v51  ;;  %v2241_v55 = vrot.slane %v2239_v51, 4 }
 0x6d5   : > { %2478 = vst [vmem:[%s406_s19 + $0x8] sm:$0xf] %v2215_v31  ;;  %2484 = vst [vmem:[%s406_s19 + $0x10] sm:$0xf] %v2240_v54 }
 0x6d6   : > { %v2218_v58 = vsel %vm3779_vm12, %v2216_v53, %v2217_v50  ;;  %v2243_v59 = vsel %vm3774_vm11, %v2241_v55, %v2242_v52 }
 0x6d7   : > { %2479 = vst [vmem:[%s406_s19 + $0xc] sm:$0xf] %v2218_v58  ;;  %2485 = vst [vmem:[%s406_s19 + $0x14] sm:$0xf] %v2243_v59 }
 0x6d8   : > { %3013 = shalt.err (!%p3010_p3)
}
 0x6d9   : > { %s3014_s16 = scalar_lea.hbm %s3791_s25, 384  ;;  %s3018_s18 = scalar_lea.hbm %s3856_s12, 768 }
 0x6da   : > { %p3015_p4 = scmp.ne.s32.totalorder %s3791_s25, %s3014_s16  ;;  %p3019_p9 = scmp.lt.u32.totalorder %s3791_s25, %s3856_s12 }
 0x6db   : > { %p3020_p10 = scmp.lt.u32.totalorder %s3018_s18, %s3014_s16  ;;  %p3022_p12 = scmp.lt.u32.totalorder %s3014_s16, %s3791_s25 }
 0x6dc   : > { %p3016_p7 = pnand %p3015_p4, %p3174_p5 }
 0x6dd   : > { %p3021_p11 = por %p3020_p10, %p3019_p9 }
 0x6de   : > { %p3017_p8 = pneg %p3016_p7 }
 0x6df   : > { %p3023_p13 = por %p3022_p12, %p3021_p11 }
 0x6e1   : > { %p3024_p0 = pnand %p3023_p13, %p3017_p8 }
 0x6e3   : > { %3027 = shalt.err (!%p3024_p0)
}
 0x6e4   : > { %s3070_s17 = smov 4   ;;  %s3880_s28 = smov 64  }
 0x6e5   : > { %2890 = dma.vmem_to_hbm [thread:$0]  (%p3174_p5), %s3793_s26, 384, %s3791_s25, %s3801_s15, %s3880_s28, %s3880_s28, %s3070_s17  }
 0x6e6 PF: > { %p2896_p1 = scmp.ge.s32.totalorder %s3062_s24, 2  ;;  %s2278_s0 = sand.u32 1, %s3050_s21  }
 0x6e7   : > { %s2279_s16 = scalar_lea.sflag [#allocation4], %s2278_s0 }
 0x6e8   : > { %p2893_p2 = pnand %p2896_p1, %p3178_p6 }
 0x6ea   : > { %3045 = dma.done.wait (!%p2893_p2), %s2279_s16, 384  }
 0x6eb   : > { %3047 = vsyncadd (!%p2893_p2), %s2279_s16, 4294966912  ;;  %p22_p3 = scmp.ge.s32.totalorder %s3161_s27, 4   ;;  %s3881_s21 = smov %s3054_s22 }
 0x6ec   : > { %s3882_s22 = smov %s3058_s23  ;;  %s3883_s23 = smov %s3172_s30 }
 0x6ed   : > { %s3884_s24 = smov %s3161_s27  ;;  %24 = sbr.rel (!%p22_p3) target bundleno = 5 (0x5), region = 111 }
 0x6f4   :  { %2284 = vsyncpa [#allocation4], 1 }
 0x6f5   :  { %2286 = vsyncpa [#allocation4 + $0x1], 1 }

</bundles_post_ra>
